<compile_context>
chip_gen: v6e
topology: v6e:2x2x1
jax: 0.10.0
libtpu: 0.0.40
codegen_flags: <defaults>
</compile_context>

<pallas_src>
import functools
import math

import jax
import jax.numpy as jnp
from jax.experimental import pallas as pl
from jax.experimental.pallas import tpu as pltpu

# Keep f32 matmuls fully accurate on the MXU (also used by the pure-JAX reference).
jax.config.update("jax_default_matmul_precision", "highest")

EPS = 1e-5


# ----------------------------------------------------------------------------
# Fused attention block:  LayerNorm(x + Proj(MHA(Wq x, Wkv src)))
# ----------------------------------------------------------------------------

def _attn_block_kernel(x_ref, kv_ref, wq_ref, bq_ref, wkv_ref, bkv_ref,
                       wo_ref, bo_ref, g_ref, be_ref, o_ref,
                       *, n_heads, causal, eps):
    x = x_ref[0]        # (L, D)  query-side activations
    src = kv_ref[0]     # (S, D)  key/value-side activations (== x for self-attn)
    L, D = x.shape
    S = src.shape[0]
    Dh = D // n_heads
    scale = 1.0 / math.sqrt(Dh)

    # Projections (K and V fused into one matmul against (D, 2D) weights).
    q = jnp.dot(x, wq_ref[...], preferred_element_type=jnp.float32) + bq_ref[...]
    kv = jnp.dot(src, wkv_ref[...], preferred_element_type=jnp.float32) + bkv_ref[...]
    k = kv[:, :D]
    v = kv[:, D:]
    wo = wo_ref[...]

    if causal:
        qi = jax.lax.broadcasted_iota(jnp.int32, (L, S), 0)
        ki = jax.lax.broadcasted_iota(jnp.int32, (L, S), 1)
        neg = jnp.float32(-1e30)   # finite: avoids NaN if a row were fully masked

    # Per-head attention; the head output is folded straight into the output
    # projection (avoids concatenate + relayout and keeps stores lane-dense on D).
    acc = jnp.zeros((L, D), jnp.float32)
    for h in range(n_heads):
        lo, hi = h * Dh, (h + 1) * Dh
        qh, kh, vh = q[:, lo:hi], k[:, lo:hi], v[:, lo:hi]
        # q @ k^T without materializing the transpose.
        s = jax.lax.dot_general(qh, kh, (((1,), (1,)), ((), ())),
                                preferred_element_type=jnp.float32) * scale
        if causal:
            s = jnp.where(ki <= qi, s, neg)
        m = jnp.max(s, axis=-1, keepdims=True)
        p = jnp.exp(s - m)
        p = p * pl.reciprocal(jnp.sum(p, axis=-1, keepdims=True), approx=True)
        out_h = jnp.dot(p, vh, preferred_element_type=jnp.float32)      # (L, Dh)
        acc = acc + jnp.dot(out_h, wo[lo:hi, :],
                            preferred_element_type=jnp.float32)          # (L, D)

    # Residual + LayerNorm epilogue, fused with the output projection.
    h_res = x + acc + bo_ref[...]
    mu = jnp.mean(h_res, axis=-1, keepdims=True)
    var = jnp.mean((h_res - mu) ** 2, axis=-1, keepdims=True)
    o_ref[0] = (h_res - mu) * jax.lax.rsqrt(var + eps) * g_ref[...] + be_ref[...]


def attn_block(x, kv_src, wq, bq, wkv, bkv, wo, bo, g, be, *, n_heads, causal,
               eps=EPS):
    B, L, D = x.shape
    S = kv_src.shape[1]
    kern = functools.partial(_attn_block_kernel, n_heads=n_heads, causal=causal,
                             eps=eps)

    def wspec(shape):
        return pl.BlockSpec(shape, lambda b: (0,) * len(shape))

    return pl.pallas_call(
        kern,
        out_shape=jax.ShapeDtypeStruct((B, L, D), jnp.float32),
        grid=(B,),
        in_specs=[
            pl.BlockSpec((1, L, D), lambda b: (b, 0, 0)),
            pl.BlockSpec((1, S, D), lambda b: (b, 0, 0)),
            wspec((D, D)),        # wq
            wspec((1, D)),        # bq
            wspec((D, 2 * D)),    # wkv (fused)
            wspec((1, 2 * D)),    # bkv (fused)
            wspec((D, D)),        # wo
            wspec((1, D)),        # bo
            wspec((1, D)),        # ln gamma
            wspec((1, D)),        # ln beta
        ],
        out_specs=pl.BlockSpec((1, L, D), lambda b: (b, 0, 0)),
        compiler_params=pltpu.CompilerParams(dimension_semantics=("parallel",)),
    )(x, kv_src, wq, bq.reshape(1, D), wkv, bkv.reshape(1, 2 * D),
      wo, bo.reshape(1, D), g.reshape(1, D), be.reshape(1, D))


# ----------------------------------------------------------------------------
# Fused FFN block:  LayerNorm(x + W2 ReLU(W1 x))    (Conv1d k=1 == matmul)
# ----------------------------------------------------------------------------

def _ffn_ln_kernel(x_ref, w1_ref, b1_ref, w2_ref, b2_ref, g_ref, be_ref, o_ref,
                   *, eps):
    x = x_ref[...]
    h = jnp.dot(x, w1_ref[...], preferred_element_type=jnp.float32) + b1_ref[...]
    h = jnp.maximum(h, 0.0)
    y = jnp.dot(h, w2_ref[...], preferred_element_type=jnp.float32) + b2_ref[...]
    r = x + y
    mu = jnp.mean(r, axis=-1, keepdims=True)
    var = jnp.mean((r - mu) ** 2, axis=-1, keepdims=True)
    o_ref[...] = (r - mu) * jax.lax.rsqrt(var + eps) * g_ref[...] + be_ref[...]


def ffn_add_layernorm(x2d, w1, b1, w2, b2, g, be, *, eps=EPS, block_m=256):
    M, D = x2d.shape
    F = w1.shape[1]
    bm = M if M <= block_m else block_m   # tile rows so the (bm, F) hidden fits VMEM
    kern = functools.partial(_ffn_ln_kernel, eps=eps)
    return pl.pallas_call(
        kern,
        out_shape=jax.ShapeDtypeStruct((M, D), jnp.float32),
        grid=(pl.cdiv(M, bm),),
        in_specs=[
            pl.BlockSpec((bm, D), lambda i: (i, 0)),
            pl.BlockSpec((D, F), lambda i: (0, 0)),
            pl.BlockSpec((1, F), lambda i: (0, 0)),
            pl.BlockSpec((F, D), lambda i: (0, 0)),
            pl.BlockSpec((1, D), lambda i: (0, 0)),
            pl.BlockSpec((1, D), lambda i: (0, 0)),
            pl.BlockSpec((1, D), lambda i: (0, 0)),
        ],
        out_specs=pl.BlockSpec((bm, D), lambda i: (i, 0)),
        compiler_params=pltpu.CompilerParams(dimension_semantics=("parallel",)),
    )(x2d, w1, b1.reshape(1, F), w2, b2.reshape(1, D),
      g.reshape(1, D), be.reshape(1, D))


# ----------------------------------------------------------------------------
# Plain LayerNorm (final `norm_layer`) — no zeros tensor, tiled over rows
# ----------------------------------------------------------------------------

def _ln_kernel(x_ref, g_ref, b_ref, o_ref, *, eps):
    x = x_ref[...]
    mu = jnp.mean(x, axis=-1, keepdims=True)
    var = jnp.mean((x - mu) ** 2, axis=-1, keepdims=True)
    o_ref[...] = (x - mu) * jax.lax.rsqrt(var + eps) * g_ref[...] + b_ref[...]


def layernorm(x2d, g, b, *, eps=EPS, block_m=512):
    M, D = x2d.shape
    bm = M if M <= block_m else block_m
    kern = functools.partial(_ln_kernel, eps=eps)
    return pl.pallas_call(
        kern,
        out_shape=jax.ShapeDtypeStruct((M, D), jnp.float32),
        grid=(pl.cdiv(M, bm),),
        in_specs=[
            pl.BlockSpec((bm, D), lambda i: (i, 0)),
            pl.BlockSpec((1, D), lambda i: (0, 0)),
            pl.BlockSpec((1, D), lambda i: (0, 0)),
        ],
        out_specs=pl.BlockSpec((bm, D), lambda i: (i, 0)),
        compiler_params=pltpu.CompilerParams(dimension_semantics=("parallel",)),
    )(x2d, g.reshape(1, D), b.reshape(1, D))


# ----------------------------------------------------------------------------
# Decoder (3 pallas_calls per layer + 1 final norm)
# ----------------------------------------------------------------------------

def decoder_layer(x, cross, p):
    B, L, D = x.shape
    H = p["n_heads"]
    # self-attention (TriangularCausalMask) + norm1
    x = attn_block(x, x, p["wq1"], p["bq1"], p["wkv1"], p["bkv1"],
                   p["wo1"], p["bo1"], p["g1"], p["be1"],
                   n_heads=H, causal=True)
    # cross-attention (cross_mask=None) + norm2
    x = attn_block(x, cross, p["wq2"], p["bq2"], p["wkv2"], p["bkv2"],
                   p["wo2"], p["bo2"], p["g2"], p["be2"],
                   n_heads=H, causal=False)
    # position-wise FFN + residual + norm3
    x2d = ffn_add_layernorm(x.reshape(B * L, D),
                            p["w_ff1"], p["b_ff1"], p["w_ff2"], p["b_ff2"],
                            p["g3"], p["be3"])
    return x2d.reshape(B, L, D)


def decoder_forward(x, cross, layer_params, norm_params):
    # Mirrors Decoder.forward (transformer_dec=False): loop layers, then norm.
    for p in layer_params:
        x = decoder_layer(x, cross, p)
    B, L, D = x.shape
    x2d = layernorm(x.reshape(B * L, D), norm_params["g"], norm_params["b"])
    return x2d.reshape(B, L, D)


# ----------------------------------------------------------------------------
# Pure-JAX reference (for correctness validation)
# ----------------------------------------------------------------------------

def _ln_ref(h, g, b, eps=EPS):
    mu = h.mean(-1, keepdims=True)
    var = ((h - mu) ** 2).mean(-1, keepdims=True)
    return (h - mu) * jax.lax.rsqrt(var + eps) * g + b


def _attn_ref(xq, src, wq, bq, wkv, bkv, wo, bo, g, be, n_heads, causal, eps=EPS):
    B, L, D = xq.shape
    S = src.shape[1]
    Dh = D // n_heads
    q = xq @ wq + bq
    kv = src @ wkv + bkv
    k, v = kv[..., :D], kv[..., D:]

    def split(t, n):
        return t.reshape(B, n, n_heads, Dh).transpose(0, 2, 1, 3)

    qh, kh, vh = split(q, L), split(k, S), split(v, S)
    s = jnp.einsum("bhld,bhsd->bhls", qh, kh) / math.sqrt(Dh)
    if causal:
        mask = jnp.tril(jnp.ones((L, S), bool))
        s = jnp.where(mask, s, -1e30)
    p = jax.nn.softmax(s, axis=-1)
    o = jnp.einsum("bhls,bhsd->bhld", p, vh)
    o = o.transpose(0, 2, 1, 3).reshape(B, L, D) @ wo + bo
    return _ln_ref(xq + o, g, be, eps)


def decoder_ref(x, cross, layer_params, norm_params):
    for p in layer_params:
        x = _attn_ref(x, x, p["wq1"], p["bq1"], p["wkv1"], p["bkv1"],
                      p["wo1"], p["bo1"], p["g1"], p["be1"], p["n_heads"], True)
        x = _attn_ref(x, cross, p["wq2"], p["bq2"], p["wkv2"], p["bkv2"],
                      p["wo2"], p["bo2"], p["g2"], p["be2"], p["n_heads"], False)
        h = jnp.maximum(x @ p["w_ff1"] + p["b_ff1"], 0.0)
        y = h @ p["w_ff2"] + p["b_ff2"]
        x = _ln_ref(x + y, p["g3"], p["be3"])
    return _ln_ref(x, norm_params["g"], norm_params["b"])


# ----------------------------------------------------------------------------
# Deterministic parameter init
# ----------------------------------------------------------------------------

def init_layer_params(key, d_model, n_heads, d_ff):
    d = d_model
    ks = jax.random.split(key, 24)

    def w(k, din, dout, scale=0.02):
        return scale * jax.random.normal(k, (din, dout), jnp.float32)

    def b(k, dim, scale=0.02):
        return scale * jax.random.normal(k, (dim,), jnp.float32)

    p = {"n_heads": n_heads}
    p["wq1"] = w(ks[0], d, d)
    p["wkv1"] = jnp.concatenate([w(ks[1], d, d), w(ks[2], d, d)], axis=1)  # fused K|V
    p["wo1"] = w(ks[3], d, d)
    p["wq2"] = w(ks[4], d, d)
    p["wkv2"] = jnp.concatenate([w(ks[5], d, d), w(ks[6], d, d)], axis=1)
    p["wo2"] = w(ks[7], d, d)
    p["w_ff1"] = w(ks[8], d, d_ff)
    p["w_ff2"] = w(ks[9], d_ff, d)
    p["bq1"] = b(ks[10], d); p["bkv1"] = b(ks[11], 2 * d); p["bo1"] = b(ks[12], d)
    p["bq2"] = b(ks[13], d); p["bkv2"] = b(ks[14], 2 * d); p["bo2"] = b(ks[15], d)
    p["b_ff1"] = b(ks[16], d_ff); p["b_ff2"] = b(ks[17], d)
    for i, (kg, kb) in zip(("1", "2", "3"),
                           [(ks[18], ks[19]), (ks[20], ks[21]), (ks[22], ks[23])]):
        p["g" + i] = 1.0 + 0.05 * jax.random.normal(kg, (d,), jnp.float32)
        p["be" + i] = 0.05 * jax.random.normal(kb, (d,), jnp.float32)
    return p


if __name__ == "__main__":
    B, L_dec, L_enc = 2, 8, 16
    d_model, n_heads, d_ff, n_layers = 32, 4, 64, 2

    root = jax.random.PRNGKey(0)
    k_x, k_c, k_n, *k_layers = jax.random.split(root, 3 + n_layers)

    x = jax.random.normal(k_x, (B, L_dec, d_model), jnp.float32)      # decoder input
    cross = jax.random.normal(k_c, (B, L_enc, d_model), jnp.float32)  # encoder output

    layer_params = [init_layer_params(k, d_model, n_heads, d_ff) for k in k_layers]
    kg, kb = jax.random.split(k_n)
    norm_params = {
        "g": 1.0 + 0.05 * jax.random.normal(kg, (d_model,), jnp.float32),
        "b": 0.05 * jax.random.normal(kb, (d_model,), jnp.float32),
    }

    out = decoder_forward(x, cross, layer_params, norm_params)
    out = jax.block_until_ready(out)

    assert out.shape == (B, L_dec, d_model)
    assert jnp.all(jnp.isfinite(out))

    ref = decoder_ref(x, cross, layer_params, norm_params)
    max_diff = float(jnp.max(jnp.abs(out - ref)))
    assert max_diff < 5e-2, f"mismatch vs reference: max|diff|={max_diff}"

    print("KERNEL_OK")
</pallas_src>

<mosaic_0001>
module attributes {stable_mosaic.version = 11 : i64} {
  func.func @_attn_block_kernel(%arg0: i32, %arg1: memref<1x8x32xf32, #tpu.memory_space<vmem>>, %arg2: memref<1x8x32xf32, #tpu.memory_space<vmem>>, %arg3: memref<32x32xf32, #tpu.memory_space<vmem>>, %arg4: memref<1x32xf32, #tpu.memory_space<vmem>>, %arg5: memref<32x64xf32, #tpu.memory_space<vmem>>, %arg6: memref<1x64xf32, #tpu.memory_space<vmem>>, %arg7: memref<32x32xf32, #tpu.memory_space<vmem>>, %arg8: memref<1x32xf32, #tpu.memory_space<vmem>>, %arg9: memref<1x32xf32, #tpu.memory_space<vmem>>, %arg10: memref<1x32xf32, #tpu.memory_space<vmem>>, %arg11: memref<1x8x32xf32, #tpu.memory_space<vmem>>) attributes {dimension_semantics = [#tpu.dimension_semantics<parallel>], iteration_bounds = array<i64: 2>, scalar_prefetch = 0 : i64, scratch_operands = 0 : i64, tpu.core_type = #tpu.core_type<tc>, window_params = [{transform_indices = @transform_0, window_bounds = array<i64: 1, 8, 32>}, {transform_indices = @transform_1, window_bounds = array<i64: 1, 8, 32>}, {pipeline_mode = #tpu.pipeline_mode<synchronous>, transform_indices = @transform_2, window_bounds = array<i64: 32, 32>}, {pipeline_mode = #tpu.pipeline_mode<synchronous>, transform_indices = @transform_3, window_bounds = array<i64: 1, 32>}, {pipeline_mode = #tpu.pipeline_mode<synchronous>, transform_indices = @transform_4, window_bounds = array<i64: 32, 64>}, {pipeline_mode = #tpu.pipeline_mode<synchronous>, transform_indices = @transform_5, window_bounds = array<i64: 1, 64>}, {pipeline_mode = #tpu.pipeline_mode<synchronous>, transform_indices = @transform_6, window_bounds = array<i64: 32, 32>}, {pipeline_mode = #tpu.pipeline_mode<synchronous>, transform_indices = @transform_7, window_bounds = array<i64: 1, 32>}, {pipeline_mode = #tpu.pipeline_mode<synchronous>, transform_indices = @transform_8, window_bounds = array<i64: 1, 32>}, {pipeline_mode = #tpu.pipeline_mode<synchronous>, transform_indices = @transform_9, window_bounds = array<i64: 1, 32>}, {transform_indices = @transform_10, window_bounds = array<i64: 1, 8, 32>}]} {
    %c0 = arith.constant 0 : index
    %c0_0 = arith.constant 0 : index
    %c0_1 = arith.constant 0 : index
    %0 = vector.load %arg1[%c0, %c0_0, %c0_1] : memref<1x8x32xf32, #tpu.memory_space<vmem>>, vector<1x8x32xf32>
    %1 = vector.shape_cast %0 : vector<1x8x32xf32> to vector<8x32xf32>
    %c0_2 = arith.constant 0 : index
    %c0_3 = arith.constant 0 : index
    %c0_4 = arith.constant 0 : index
    %2 = vector.load %arg2[%c0_2, %c0_3, %c0_4] : memref<1x8x32xf32, #tpu.memory_space<vmem>>, vector<1x8x32xf32>
    %3 = vector.shape_cast %2 : vector<1x8x32xf32> to vector<8x32xf32>
    %c0_5 = arith.constant 0 : index
    %c0_6 = arith.constant 0 : index
    %4 = vector.load %arg3[%c0_5, %c0_6] : memref<32x32xf32, #tpu.memory_space<vmem>>, vector<32x32xf32>
    %cst = arith.constant dense<0.000000e+00> : vector<8x32xf32>
    %5 = tpu.matmul %1, %4, %cst {dimension_numbers = #tpu.dot_dimension_numbers<[1], [0], [0], [1], [0, 0, 1, 1], [], []>, precision = #tpu.contract_precision<fp32>} : vector<8x32xf32>, vector<32x32xf32>, vector<8x32xf32> -> vector<8x32xf32>
    %c0_7 = arith.constant 0 : index
    %c0_8 = arith.constant 0 : index
    %6 = vector.load %arg4[%c0_7, %c0_8] : memref<1x32xf32, #tpu.memory_space<vmem>>, vector<1x32xf32>
    %7 = vector.broadcast %6 : vector<1x32xf32> to vector<8x32xf32>
    %8 = arith.addf %5, %7 : vector<8x32xf32>
    %c0_9 = arith.constant 0 : index
    %c0_10 = arith.constant 0 : index
    %9 = vector.load %arg5[%c0_9, %c0_10] : memref<32x64xf32, #tpu.memory_space<vmem>>, vector<32x64xf32>
    %cst_11 = arith.constant dense<0.000000e+00> : vector<8x64xf32>
    %10 = tpu.matmul %3, %9, %cst_11 {dimension_numbers = #tpu.dot_dimension_numbers<[1], [0], [0], [1], [0, 0, 1, 1], [], []>, precision = #tpu.contract_precision<fp32>} : vector<8x32xf32>, vector<32x64xf32>, vector<8x64xf32> -> vector<8x64xf32>
    %c0_12 = arith.constant 0 : index
    %c0_13 = arith.constant 0 : index
    %11 = vector.load %arg6[%c0_12, %c0_13] : memref<1x64xf32, #tpu.memory_space<vmem>>, vector<1x64xf32>
    %12 = vector.broadcast %11 : vector<1x64xf32> to vector<8x64xf32>
    %13 = arith.addf %10, %12 : vector<8x64xf32>
    %14 = vector.extract_strided_slice %13 {offsets = [0, 0], sizes = [8, 32], strides = [1, 1]} : vector<8x64xf32> to vector<8x32xf32>
    %15 = vector.extract_strided_slice %13 {offsets = [0, 32], sizes = [8, 32], strides = [1, 1]} : vector<8x64xf32> to vector<8x32xf32>
    %c0_14 = arith.constant 0 : index
    %c0_15 = arith.constant 0 : index
    %16 = vector.load %arg7[%c0_14, %c0_15] : memref<32x32xf32, #tpu.memory_space<vmem>>, vector<32x32xf32>
    %17 = tpu.iota {dimensions = array<i32: 0>} : vector<8x8xi32>
    %18 = tpu.iota {dimensions = array<i32: 1>} : vector<8x8xi32>
    %cst_16 = arith.constant 0.000000e+00 : f32
    %19 = vector.broadcast %cst_16 : f32 to vector<8x32xf32>
    %20 = vector.extract_strided_slice %8 {offsets = [0, 0], sizes = [8, 8], strides = [1, 1]} : vector<8x32xf32> to vector<8x8xf32>
    %21 = vector.extract_strided_slice %14 {offsets = [0, 0], sizes = [8, 8], strides = [1, 1]} : vector<8x32xf32> to vector<8x8xf32>
    %22 = vector.extract_strided_slice %15 {offsets = [0, 0], sizes = [8, 8], strides = [1, 1]} : vector<8x32xf32> to vector<8x8xf32>
    %cst_17 = arith.constant dense<0.000000e+00> : vector<8x8xf32>
    %23 = tpu.matmul %20, %21, %cst_17 {dimension_numbers = #tpu.dot_dimension_numbers<[1], [1], [0], [0], [0, 0, 1, 0], [], []>, precision = #tpu.contract_precision<fp32>} : vector<8x8xf32>, vector<8x8xf32>, vector<8x8xf32> -> vector<8x8xf32>
    %cst_18 = arith.constant 0.353553385 : f32
    %24 = vector.broadcast %cst_18 : f32 to vector<8x8xf32>
    %25 = arith.mulf %23, %24 : vector<8x8xf32>
    %26 = arith.cmpi sle, %18, %17 : vector<8x8xi32>
    %cst_19 = arith.constant -1.000000e+30 : f32
    %27 = vector.broadcast %cst_19 : f32 to vector<8x8xf32>
    %28 = arith.select %26, %25, %27 : vector<8x8xi1>, vector<8x8xf32>
    %cst_20 = arith.constant dense<0xFF800000> : vector<8xf32>
    %29 = vector.multi_reduction <maximumf>, %28, %cst_20 [1] : vector<8x8xf32> to vector<8xf32>
    %30 = vector.shape_cast %29 : vector<8xf32> to vector<8x1xf32>
    %31 = vector.broadcast %30 : vector<8x1xf32> to vector<8x8xf32>
    %32 = arith.subf %28, %31 : vector<8x8xf32>
    %33 = math.exp %32 : vector<8x8xf32>
    %cst_21 = arith.constant dense<0.000000e+00> : vector<8xf32>
    %34 = vector.multi_reduction <add>, %33, %cst_21 [1] : vector<8x8xf32> to vector<8xf32>
    %35 = vector.shape_cast %34 : vector<8xf32> to vector<8x1xf32>
    %36 = tpu.reciprocal %35 {approx = true} : vector<8x1xf32> -> vector<8x1xf32>
    %37 = vector.broadcast %36 : vector<8x1xf32> to vector<8x8xf32>
    %38 = arith.mulf %33, %37 : vector<8x8xf32>
    %cst_22 = arith.constant dense<0.000000e+00> : vector<8x8xf32>
    %39 = tpu.matmul %38, %22, %cst_22 {dimension_numbers = #tpu.dot_dimension_numbers<[1], [0], [0], [1], [0, 0, 1, 1], [], []>, precision = #tpu.contract_precision<fp32>} : vector<8x8xf32>, vector<8x8xf32>, vector<8x8xf32> -> vector<8x8xf32>
    %40 = vector.extract_strided_slice %16 {offsets = [0, 0], sizes = [8, 32], strides = [1, 1]} : vector<32x32xf32> to vector<8x32xf32>
    %cst_23 = arith.constant dense<0.000000e+00> : vector<8x32xf32>
    %41 = tpu.matmul %39, %40, %cst_23 {dimension_numbers = #tpu.dot_dimension_numbers<[1], [0], [0], [1], [0, 0, 1, 1], [], []>, precision = #tpu.contract_precision<fp32>} : vector<8x8xf32>, vector<8x32xf32>, vector<8x32xf32> -> vector<8x32xf32>
    %42 = arith.addf %19, %41 : vector<8x32xf32>
    %43 = vector.extract_strided_slice %8 {offsets = [0, 8], sizes = [8, 8], strides = [1, 1]} : vector<8x32xf32> to vector<8x8xf32>
    %44 = vector.extract_strided_slice %14 {offsets = [0, 8], sizes = [8, 8], strides = [1, 1]} : vector<8x32xf32> to vector<8x8xf32>
    %45 = vector.extract_strided_slice %15 {offsets = [0, 8], sizes = [8, 8], strides = [1, 1]} : vector<8x32xf32> to vector<8x8xf32>
    %cst_24 = arith.constant dense<0.000000e+00> : vector<8x8xf32>
    %46 = tpu.matmul %43, %44, %cst_24 {dimension_numbers = #tpu.dot_dimension_numbers<[1], [1], [0], [0], [0, 0, 1, 0], [], []>, precision = #tpu.contract_precision<fp32>} : vector<8x8xf32>, vector<8x8xf32>, vector<8x8xf32> -> vector<8x8xf32>
    %cst_25 = arith.constant 0.353553385 : f32
    %47 = vector.broadcast %cst_25 : f32 to vector<8x8xf32>
    %48 = arith.mulf %46, %47 : vector<8x8xf32>
    %49 = arith.cmpi sle, %18, %17 : vector<8x8xi32>
    %cst_26 = arith.constant -1.000000e+30 : f32
    %50 = vector.broadcast %cst_26 : f32 to vector<8x8xf32>
    %51 = arith.select %49, %48, %50 : vector<8x8xi1>, vector<8x8xf32>
    %cst_27 = arith.constant dense<0xFF800000> : vector<8xf32>
    %52 = vector.multi_reduction <maximumf>, %51, %cst_27 [1] : vector<8x8xf32> to vector<8xf32>
    %53 = vector.shape_cast %52 : vector<8xf32> to vector<8x1xf32>
    %54 = vector.broadcast %53 : vector<8x1xf32> to vector<8x8xf32>
    %55 = arith.subf %51, %54 : vector<8x8xf32>
    %56 = math.exp %55 : vector<8x8xf32>
    %cst_28 = arith.constant dense<0.000000e+00> : vector<8xf32>
    %57 = vector.multi_reduction <add>, %56, %cst_28 [1] : vector<8x8xf32> to vector<8xf32>
    %58 = vector.shape_cast %57 : vector<8xf32> to vector<8x1xf32>
    %59 = tpu.reciprocal %58 {approx = true} : vector<8x1xf32> -> vector<8x1xf32>
    %60 = vector.broadcast %59 : vector<8x1xf32> to vector<8x8xf32>
    %61 = arith.mulf %56, %60 : vector<8x8xf32>
    %cst_29 = arith.constant dense<0.000000e+00> : vector<8x8xf32>
    %62 = tpu.matmul %61, %45, %cst_29 {dimension_numbers = #tpu.dot_dimension_numbers<[1], [0], [0], [1], [0, 0, 1, 1], [], []>, precision = #tpu.contract_precision<fp32>} : vector<8x8xf32>, vector<8x8xf32>, vector<8x8xf32> -> vector<8x8xf32>
    %63 = vector.extract_strided_slice %16 {offsets = [8, 0], sizes = [8, 32], strides = [1, 1]} : vector<32x32xf32> to vector<8x32xf32>
    %cst_30 = arith.constant dense<0.000000e+00> : vector<8x32xf32>
    %64 = tpu.matmul %62, %63, %cst_30 {dimension_numbers = #tpu.dot_dimension_numbers<[1], [0], [0], [1], [0, 0, 1, 1], [], []>, precision = #tpu.contract_precision<fp32>} : vector<8x8xf32>, vector<8x32xf32>, vector<8x32xf32> -> vector<8x32xf32>
    %65 = arith.addf %42, %64 : vector<8x32xf32>
    %66 = vector.extract_strided_slice %8 {offsets = [0, 16], sizes = [8, 8], strides = [1, 1]} : vector<8x32xf32> to vector<8x8xf32>
    %67 = vector.extract_strided_slice %14 {offsets = [0, 16], sizes = [8, 8], strides = [1, 1]} : vector<8x32xf32> to vector<8x8xf32>
    %68 = vector.extract_strided_slice %15 {offsets = [0, 16], sizes = [8, 8], strides = [1, 1]} : vector<8x32xf32> to vector<8x8xf32>
    %cst_31 = arith.constant dense<0.000000e+00> : vector<8x8xf32>
    %69 = tpu.matmul %66, %67, %cst_31 {dimension_numbers = #tpu.dot_dimension_numbers<[1], [1], [0], [0], [0, 0, 1, 0], [], []>, precision = #tpu.contract_precision<fp32>} : vector<8x8xf32>, vector<8x8xf32>, vector<8x8xf32> -> vector<8x8xf32>
    %cst_32 = arith.constant 0.353553385 : f32
    %70 = vector.broadcast %cst_32 : f32 to vector<8x8xf32>
    %71 = arith.mulf %69, %70 : vector<8x8xf32>
    %72 = arith.cmpi sle, %18, %17 : vector<8x8xi32>
    %cst_33 = arith.constant -1.000000e+30 : f32
    %73 = vector.broadcast %cst_33 : f32 to vector<8x8xf32>
    %74 = arith.select %72, %71, %73 : vector<8x8xi1>, vector<8x8xf32>
    %cst_34 = arith.constant dense<0xFF800000> : vector<8xf32>
    %75 = vector.multi_reduction <maximumf>, %74, %cst_34 [1] : vector<8x8xf32> to vector<8xf32>
    %76 = vector.shape_cast %75 : vector<8xf32> to vector<8x1xf32>
    %77 = vector.broadcast %76 : vector<8x1xf32> to vector<8x8xf32>
    %78 = arith.subf %74, %77 : vector<8x8xf32>
    %79 = math.exp %78 : vector<8x8xf32>
    %cst_35 = arith.constant dense<0.000000e+00> : vector<8xf32>
    %80 = vector.multi_reduction <add>, %79, %cst_35 [1] : vector<8x8xf32> to vector<8xf32>
    %81 = vector.shape_cast %80 : vector<8xf32> to vector<8x1xf32>
    %82 = tpu.reciprocal %81 {approx = true} : vector<8x1xf32> -> vector<8x1xf32>
    %83 = vector.broadcast %82 : vector<8x1xf32> to vector<8x8xf32>
    %84 = arith.mulf %79, %83 : vector<8x8xf32>
    %cst_36 = arith.constant dense<0.000000e+00> : vector<8x8xf32>
    %85 = tpu.matmul %84, %68, %cst_36 {dimension_numbers = #tpu.dot_dimension_numbers<[1], [0], [0], [1], [0, 0, 1, 1], [], []>, precision = #tpu.contract_precision<fp32>} : vector<8x8xf32>, vector<8x8xf32>, vector<8x8xf32> -> vector<8x8xf32>
    %86 = vector.extract_strided_slice %16 {offsets = [16, 0], sizes = [8, 32], strides = [1, 1]} : vector<32x32xf32> to vector<8x32xf32>
    %cst_37 = arith.constant dense<0.000000e+00> : vector<8x32xf32>
    %87 = tpu.matmul %85, %86, %cst_37 {dimension_numbers = #tpu.dot_dimension_numbers<[1], [0], [0], [1], [0, 0, 1, 1], [], []>, precision = #tpu.contract_precision<fp32>} : vector<8x8xf32>, vector<8x32xf32>, vector<8x32xf32> -> vector<8x32xf32>
    %88 = arith.addf %65, %87 : vector<8x32xf32>
    %89 = vector.extract_strided_slice %8 {offsets = [0, 24], sizes = [8, 8], strides = [1, 1]} : vector<8x32xf32> to vector<8x8xf32>
    %90 = vector.extract_strided_slice %14 {offsets = [0, 24], sizes = [8, 8], strides = [1, 1]} : vector<8x32xf32> to vector<8x8xf32>
    %91 = vector.extract_strided_slice %15 {offsets = [0, 24], sizes = [8, 8], strides = [1, 1]} : vector<8x32xf32> to vector<8x8xf32>
    %cst_38 = arith.constant dense<0.000000e+00> : vector<8x8xf32>
    %92 = tpu.matmul %89, %90, %cst_38 {dimension_numbers = #tpu.dot_dimension_numbers<[1], [1], [0], [0], [0, 0, 1, 0], [], []>, precision = #tpu.contract_precision<fp32>} : vector<8x8xf32>, vector<8x8xf32>, vector<8x8xf32> -> vector<8x8xf32>
    %cst_39 = arith.constant 0.353553385 : f32
    %93 = vector.broadcast %cst_39 : f32 to vector<8x8xf32>
    %94 = arith.mulf %92, %93 : vector<8x8xf32>
    %95 = arith.cmpi sle, %18, %17 : vector<8x8xi32>
    %cst_40 = arith.constant -1.000000e+30 : f32
    %96 = vector.broadcast %cst_40 : f32 to vector<8x8xf32>
    %97 = arith.select %95, %94, %96 : vector<8x8xi1>, vector<8x8xf32>
    %cst_41 = arith.constant dense<0xFF800000> : vector<8xf32>
    %98 = vector.multi_reduction <maximumf>, %97, %cst_41 [1] : vector<8x8xf32> to vector<8xf32>
    %99 = vector.shape_cast %98 : vector<8xf32> to vector<8x1xf32>
    %100 = vector.broadcast %99 : vector<8x1xf32> to vector<8x8xf32>
    %101 = arith.subf %97, %100 : vector<8x8xf32>
    %102 = math.exp %101 : vector<8x8xf32>
    %cst_42 = arith.constant dense<0.000000e+00> : vector<8xf32>
    %103 = vector.multi_reduction <add>, %102, %cst_42 [1] : vector<8x8xf32> to vector<8xf32>
    %104 = vector.shape_cast %103 : vector<8xf32> to vector<8x1xf32>
    %105 = tpu.reciprocal %104 {approx = true} : vector<8x1xf32> -> vector<8x1xf32>
    %106 = vector.broadcast %105 : vector<8x1xf32> to vector<8x8xf32>
    %107 = arith.mulf %102, %106 : vector<8x8xf32>
    %cst_43 = arith.constant dense<0.000000e+00> : vector<8x8xf32>
    %108 = tpu.matmul %107, %91, %cst_43 {dimension_numbers = #tpu.dot_dimension_numbers<[1], [0], [0], [1], [0, 0, 1, 1], [], []>, precision = #tpu.contract_precision<fp32>} : vector<8x8xf32>, vector<8x8xf32>, vector<8x8xf32> -> vector<8x8xf32>
    %109 = vector.extract_strided_slice %16 {offsets = [24, 0], sizes = [8, 32], strides = [1, 1]} : vector<32x32xf32> to vector<8x32xf32>
    %cst_44 = arith.constant dense<0.000000e+00> : vector<8x32xf32>
    %110 = tpu.matmul %108, %109, %cst_44 {dimension_numbers = #tpu.dot_dimension_numbers<[1], [0], [0], [1], [0, 0, 1, 1], [], []>, precision = #tpu.contract_precision<fp32>} : vector<8x8xf32>, vector<8x32xf32>, vector<8x32xf32> -> vector<8x32xf32>
    %111 = arith.addf %88, %110 : vector<8x32xf32>
    %112 = arith.addf %1, %111 : vector<8x32xf32>
    %c0_45 = arith.constant 0 : index
    %c0_46 = arith.constant 0 : index
    %113 = vector.load %arg8[%c0_45, %c0_46] : memref<1x32xf32, #tpu.memory_space<vmem>>, vector<1x32xf32>
    %114 = vector.broadcast %113 : vector<1x32xf32> to vector<8x32xf32>
    %115 = arith.addf %112, %114 : vector<8x32xf32>
    %cst_47 = arith.constant dense<0.000000e+00> : vector<8xf32>
    %116 = vector.multi_reduction <add>, %115, %cst_47 [1] : vector<8x32xf32> to vector<8xf32>
    %117 = vector.shape_cast %116 : vector<8xf32> to vector<8x1xf32>
    %cst_48 = arith.constant 3.200000e+01 : f32
    %118 = vector.broadcast %cst_48 : f32 to vector<8x1xf32>
    %119 = arith.divf %117, %118 : vector<8x1xf32>
    %120 = vector.broadcast %119 : vector<8x1xf32> to vector<8x32xf32>
    %121 = arith.subf %115, %120 : vector<8x32xf32>
    %122 = arith.mulf %121, %121 : vector<8x32xf32>
    %cst_49 = arith.constant dense<0.000000e+00> : vector<8xf32>
    %123 = vector.multi_reduction <add>, %122, %cst_49 [1] : vector<8x32xf32> to vector<8xf32>
    %124 = vector.shape_cast %123 : vector<8xf32> to vector<8x1xf32>
    %cst_50 = arith.constant 3.200000e+01 : f32
    %125 = vector.broadcast %cst_50 : f32 to vector<8x1xf32>
    %126 = arith.divf %124, %125 : vector<8x1xf32>
    %127 = vector.broadcast %119 : vector<8x1xf32> to vector<8x32xf32>
    %128 = arith.subf %115, %127 : vector<8x32xf32>
    %cst_51 = arith.constant 9.99999974E-6 : f32
    %129 = vector.broadcast %cst_51 : f32 to vector<8x1xf32>
    %130 = arith.addf %126, %129 : vector<8x1xf32>
    %131 = math.rsqrt %130 : vector<8x1xf32>
    %132 = vector.broadcast %131 : vector<8x1xf32> to vector<8x32xf32>
    %133 = arith.mulf %128, %132 : vector<8x32xf32>
    %c0_52 = arith.constant 0 : index
    %c0_53 = arith.constant 0 : index
    %134 = vector.load %arg9[%c0_52, %c0_53] : memref<1x32xf32, #tpu.memory_space<vmem>>, vector<1x32xf32>
    %135 = vector.broadcast %134 : vector<1x32xf32> to vector<8x32xf32>
    %136 = arith.mulf %133, %135 : vector<8x32xf32>
    %c0_54 = arith.constant 0 : index
    %c0_55 = arith.constant 0 : index
    %137 = vector.load %arg10[%c0_54, %c0_55] : memref<1x32xf32, #tpu.memory_space<vmem>>, vector<1x32xf32>
    %138 = vector.broadcast %137 : vector<1x32xf32> to vector<8x32xf32>
    %139 = arith.addf %136, %138 : vector<8x32xf32>
    %c0_56 = arith.constant 0 : index
    %c0_57 = arith.constant 0 : index
    %c0_58 = arith.constant 0 : index
    %140 = vector.load %arg11[%c0_56, %c0_57, %c0_58] : memref<1x8x32xf32, #tpu.memory_space<vmem>>, vector<1x8x32xf32>
    %141 = vector.shape_cast %140 : vector<1x8x32xf32> to vector<8x32xf32>
    %142 = vector.shape_cast %139 : vector<8x32xf32> to vector<1x8x32xf32>
    tpu.vector_store %arg11[%c0_56, %c0_57, %c0_58], %142 {strides = array<i32>} : memref<1x8x32xf32, #tpu.memory_space<vmem>>, vector<1x8x32xf32>,
    return
  }
  func.func @transform_0(%arg0: i32) -> (i32, i32, i32) {
    %c0_i32 = arith.constant 0 : i32
    %c0_i32_0 = arith.constant 0 : i32
    %c0_i32_1 = arith.constant 0 : i32
    return %arg0, %c0_i32, %c0_i32_0 : i32, i32, i32
  }
  func.func @transform_1(%arg0: i32) -> (i32, i32, i32) {
    %c0_i32 = arith.constant 0 : i32
    %c0_i32_0 = arith.constant 0 : i32
    %c0_i32_1 = arith.constant 0 : i32
    return %arg0, %c0_i32, %c0_i32_0 : i32, i32, i32
  }
  func.func @transform_2(%arg0: i32) -> (i32, i32) {
    %c0_i32 = arith.constant 0 : i32
    %c0_i32_0 = arith.constant 0 : i32
    %c0_i32_1 = arith.constant 0 : i32
    return %c0_i32, %c0_i32_0 : i32, i32
  }
  func.func @transform_3(%arg0: i32) -> (i32, i32) {
    %c0_i32 = arith.constant 0 : i32
    %c0_i32_0 = arith.constant 0 : i32
    %c0_i32_1 = arith.constant 0 : i32
    return %c0_i32, %c0_i32_0 : i32, i32
  }
  func.func @transform_4(%arg0: i32) -> (i32, i32) {
    %c0_i32 = arith.constant 0 : i32
    %c0_i32_0 = arith.constant 0 : i32
    %c0_i32_1 = arith.constant 0 : i32
    return %c0_i32, %c0_i32_0 : i32, i32
  }
  func.func @transform_5(%arg0: i32) -> (i32, i32) {
    %c0_i32 = arith.constant 0 : i32
    %c0_i32_0 = arith.constant 0 : i32
    %c0_i32_1 = arith.constant 0 : i32
    return %c0_i32, %c0_i32_0 : i32, i32
  }
  func.func @transform_6(%arg0: i32) -> (i32, i32) {
    %c0_i32 = arith.constant 0 : i32
    %c0_i32_0 = arith.constant 0 : i32
    %c0_i32_1 = arith.constant 0 : i32
    return %c0_i32, %c0_i32_0 : i32, i32
  }
  func.func @transform_7(%arg0: i32) -> (i32, i32) {
    %c0_i32 = arith.constant 0 : i32
    %c0_i32_0 = arith.constant 0 : i32
    %c0_i32_1 = arith.constant 0 : i32
    return %c0_i32, %c0_i32_0 : i32, i32
  }
  func.func @transform_8(%arg0: i32) -> (i32, i32) {
    %c0_i32 = arith.constant 0 : i32
    %c0_i32_0 = arith.constant 0 : i32
    %c0_i32_1 = arith.constant 0 : i32
    return %c0_i32, %c0_i32_0 : i32, i32
  }
  func.func @transform_9(%arg0: i32) -> (i32, i32) {
    %c0_i32 = arith.constant 0 : i32
    %c0_i32_0 = arith.constant 0 : i32
    %c0_i32_1 = arith.constant 0 : i32
    return %c0_i32, %c0_i32_0 : i32, i32
  }
  func.func @transform_10(%arg0: i32) -> (i32, i32, i32) {
    %c0_i32 = arith.constant 0 : i32
    %c0_i32_0 = arith.constant 0 : i32
    %c0_i32_1 = arith.constant 0 : i32
    return %arg0, %c0_i32, %c0_i32_0 : i32, i32, i32
  }
}

</mosaic_0001>

<bundles_post_ra>
// kernel: tpu_custom_call.1
= control target key start
LH: loop header
LB: loop body
LE: loop exit
PB: predicated region body
PF: predicated region fallthrough
CT: control target
= control target key end

     0   :  { %s9002_s0 = inlined_call_operand.hbm [shape: f32[2,8,32], index: 0, kind: input, shape index: {}]   ;;  %s9003_s1 = inlined_call_operand.hbm [shape: f32[2,8,32], index: 1, kind: input, shape index: {}]   ;;  %s9004_s2 = inlined_call_operand.hbm [shape: f32[32,32], index: 2, kind: input, shape index: {}]   ;;  %s9005_s3 = inlined_call_operand.vmem [shape: f32[1,32], index: 3, kind: input, shape index: {}]   ;;  %s9006_s4 = inlined_call_operand.hbm [shape: f32[32,64], index: 4, kind: input, shape index: {}]   ;;  %s9007_s5 = inlined_call_operand.vmem [shape: f32[1,64], index: 5, kind: input, shape index: {}]   ;;  %s9008_s6 = inlined_call_operand.hbm [shape: f32[32,32], index: 6, kind: input, shape index: {}]   ;;  %s9009_s7 = inlined_call_operand.vmem [shape: f32[1,32], index: 7, kind: input, shape index: {}]   ;;  %s9010_s8 = inlined_call_operand.vmem [shape: f32[1,32], index: 8, kind: input, shape index: {}]   ;;  %s9011_s9 = inlined_call_operand.vmem [shape: f32[1,32], index: 9, kind: input, shape index: {}]   ;;  %s9012_s10 = inlined_call_operand.hbm [shape: f32[2,8,32], index: 10, kind: output, shape index: {}]  }
   0x1   :  { %9021 = sst [smem:[#allocation21_spill]] %s9004_s2 }
   0x2   :  { %9022 = sst [smem:[#allocation22_spill]] %s9006_s4 }
   0x3   :  { %9023 = sst [smem:[#allocation23_spill]] %s9008_s6 }
   0x4   :  { %15 = vsyncpa [#allocation3], 0 }
   0x5   :  { %17 = vsyncpa [#allocation3 + $0x1], 0 }
   0x6   :  { %18 = vsyncpa [#allocation6], 0 }
   0x7   :  { %20 = vsyncpa [#allocation6 + $0x1], 0 }
   0x8   :  { %21 = vsyncpa [#allocation9], 0 }
   0x9   :  { %22 = vsyncpa [#allocation4], 0 }
   0xa   :  { %24 = vsyncpa [#allocation4 + $0x1], 0  ;;  %s8231_s13 = smov 0   ;;  %s8233_s14 = smov 0  }
   0xb   :  { %s8235_s15 = smov 0   ;;  %s8237_s16 = smov 0  }
   0xc LB: > { %9024 = sst [smem:[#allocation17_spill]] %s8153_s15  ;;  %s8252_s17 = sadd.s32 4294967295, %s8157_s16   ;;  %s8157_s16 = sphi %s8237_s16, %s9048_s16   ;;  %s8153_s15 = sphi %s8235_s15, %s9050_s15   ;;  %s8149_s14 = sphi %s8233_s14, %s9052_s14   ;;  %s8145_s13 = sphi %s8231_s13, %s9051_s13  }
   0xd   : > { %s7113_s18 = sadd.s32 4294967294, %s8157_s16   ;;  %p50_p0 = scmp.ne.s32.totalorder %s8149_s14, %s8145_s13 }
   0xe   : > { %p9013_p1 = scmp.eq.s32.totalorder %s8252_s17, 0  ;;  %p274_p3 = scmp.eq.s32.totalorder %s7113_s18, 1 }
   0xf   : > { %p7114_p5 = scmp.ge.s32.totalorder %s8157_s16, 1  ;;  %p281_p7 = scmp.lt.s32.totalorder %s8157_s16, 3 }
  0x10   : > { %p8261_p4 = por %p9013_p1, %p50_p0  ;;  %p8266_p6 = por %p274_p3, %p50_p0 }
  0x11   : > { %p8271_p8 = pnand %p7114_p5, %p281_p7  ;;  %s8159_s22 = smov [#allocation7]  }
  0x12   : > { %s9025_s19 = scalar_select %p8261_p4, 1, 0 }
  0x13   : > { %s9026_s20 = scalar_select %p8266_p6, 1, 0 }
  0x14   : > { %s9028_s21 = scalar_select %p8271_p8, 1, 0 }
  0x15   : > { %9027 = sst [smem:[#allocation18_spill]] %s9026_s20  ;;  %s293_s23 = sshll.u32 %s8159_s22, 4  ;;  %s294_s23 = int_to_ptr.vmem [resolvable:$true] %s293_s23 }
  0x16   : > { %p7853_p9 = pneg %p8271_p8  ;;  %s8160_s25 = smov [#allocation8]  }
  0x17   : > { %s309_s26 = sshll.u32 %s8160_s25, 4  ;;  %s8161_s27 = smov [#allocation10]   ;;  %s310_s26 = int_to_ptr.vmem [resolvable:$true] %s309_s26 }
  0x18   : > { %p8280_p11 = pnand %p7853_p9, %p9013_p1  ;;  %s325_s28 = sshll.u32 %s8161_s27, 4  ;;  %s326_s28 = int_to_ptr.vmem [resolvable:$true] %s325_s28 }
  0x19   : > { %s7958_s29 = scalar_lea.vmem %s294_s23, 512  ;;  %p7966_p5 = scmp.lt.s32.totalorder %s294_s23, %s294_s23 }
  0x1a   : > { %p7949_p12 = pneg %p8280_p11  ;;  %p7959_p13 = scmp.ne.s32.totalorder %s294_s23, %s7958_s29 }
  0x1b   : > { %p7967_p7 = scmp.lt.s32.totalorder %s7958_s29, %s7958_s29 }
  0x1c   : > { %p7961_p0 = pnand %p7959_p13, %p7949_p12 }
  0x1d   : > { %p7968_p9 = por %p7967_p7, %p7966_p5 }
  0x1e   : > { %p7962_p3 = pneg %p7961_p0 }
  0x20   : > { %p7969_p10 = pnand %p7968_p9, %p7962_p3 }
  0x22   : > { %7972 = shalt.err (!%p7969_p10)
}
  0x23   : > { %s8162_s30 = smov 128   ;;  %s8163_s11 = smov 8  }
  0x24   : > { %s9030_s2 = sld [smem:[#allocation21_spill]]  ;;  %s7984_s22 = scalar_lea.vmem %s310_s26, 512 }
  0x25   : > { %p7985_p1 = scmp.ne.s32.totalorder %s310_s26, %s7984_s22  ;;  %p7992_p2 = scmp.lt.s32.totalorder %s310_s26, %s310_s26 }
  0x26   : > { %p7993_p6 = scmp.lt.s32.totalorder %s7984_s22, %s7984_s22 }
  0x27   : > { %p7987_p13 = pnand %p7985_p1, %p7949_p12 }
  0x28   : > { %p7994_p5 = por %p7993_p6, %p7992_p2 }
  0x29   : > { %p7988_p0 = pneg %p7987_p13 }
  0x2a   : > { %7856 = dma.hbm_to_vmem [thread:$0]  (!%p8280_p11), %s9030_s2, 512, %s294_s23, [#allocation6], %s8162_s30, %s8162_s30, %s8163_s11  }
  0x2b   : > { %p7995_p3 = pnand %p7994_p5, %p7988_p0 }
  0x2d   : > { %7998 = shalt.err (!%p7995_p3)
}
  0x2e   : > { %s9031_s4 = sld [smem:[#allocation22_spill]]  ;;  %s8010_s23 = scalar_lea.vmem %s326_s28, 512 }
  0x2f   : > { %p8011_p10 = scmp.ne.s32.totalorder %s326_s28, %s8010_s23  ;;  %p8018_p9 = scmp.lt.s32.totalorder %s326_s28, %s326_s28 }
  0x30   : > { %p8019_p13 = scmp.lt.s32.totalorder %s8010_s23, %s8010_s23 }
  0x31   : > { %p8013_p7 = pnand %p8011_p10, %p7949_p12 }
  0x32   : > { %p8020_p4 = por %p8019_p13, %p8018_p9 }
  0x33   : > { %p8014_p1 = pneg %p8013_p7 }
  0x34   : > { %7859 = dma.hbm_to_vmem [thread:$0]  (!%p8280_p11), %s9031_s4, 512, %s310_s26, [#allocation9], %s8162_s30, %s8162_s30, %s8163_s11  }
  0x35   : > { %p8021_p2 = pnand %p8020_p4, %p8014_p1 }
  0x37   : > { %8024 = shalt.err (!%p8021_p2)
}
  0x38   : > { %s9032_s6 = sld [smem:[#allocation23_spill]]  ;;  %s8311_s26 = sadd.s32 1, %s8157_s16  }
  0x39   : > { %9033 = sst [smem:[#allocation19_spill]] %s8311_s26  ;;  %s34_s18 = ssub.s32 %s8157_s16, %s8311_s26 }
  0x3a   : > { %s37_s24 = sadd.s32 1, %s8153_s15  ;;  %p35_p4 = scmp.eq.s32.totalorder %s34_s18, 0 }
  0x3b   : > { %p44_p6 = scmp.ne.s32.totalorder %s8153_s15, %s8149_s14  ;;  %p45_p12 = scmp.eq.s32.totalorder %s8157_s16, 0 }
  0x3c   : > { %p7877_p0 = scmp.lt.s32.totalorder %s8157_s16, 2  ;;  %p9035_p3 = scmp.eq.s32.totalorder %s8252_s17, 1 }
  0x3d   : > { %s8321_s22 = scalar_select %p35_p4, %s8153_s15, %s37_s24  }
  0x3e   : > { %7862 = dma.hbm_to_vmem [thread:$0]  (!%p8280_p11), %s9032_s6, 512, %s326_s28, [#allocation9], %s8162_s30, %s8162_s30, %s8163_s11  }
  0x3f   : > { %9034 = sst [smem:[#allocation20_spill]] %s8321_s22  ;;  %p46_p5 = por %p45_p12, %p44_p6 }
  0x40   : > { %p8325_p10 = por %p9035_p3, %p44_p6  ;;  %s348_s27 = sand.u32 1, %s8153_s15  }
  0x41   : > { %s7120_s23 = sshll.u32 %s8157_s16, 7  ;;  %s8331_s28 = sshll.u32 %s348_s27, 3 }
  0x42   : > { %s9036_s25 = scalar_select %p8325_p10, 1, 0 }
  0x43   : > { %s8336_s29 = scalar_lea.hbm %s9002_s0, %s7120_s23  ;;  %s352_s12 = scalar_lea.vmem [#allocation2], %s8331_s28 }
  0x44   : > { %s359_s18 = sshll.u32 %s352_s12, 4  ;;  %p8339_p11 = pnand %p7877_p0, %p46_p5  ;;  %s360_s18 = int_to_ptr.vmem [resolvable:$true] %s359_s18 }
  0x45   : > { %s8346_s6 = scalar_lea.hbm %s9003_s1, %s7120_s23  ;;  %s349_s30 = scalar_lea.sflag [#allocation3], %s348_s27 }
  0x46   : > { %s8025_s11 = scalar_lea.hbm %s8336_s29, 128  ;;  %p8027_p1 = pneg %p8339_p11 }
  0x47   : > { %p8026_p7 = scmp.ne.s32.totalorder %s8336_s29, %s8025_s11  ;;  %s8030_s15 = scalar_lea.hbm %s9002_s0, 256 }
  0x48   : > { %p8031_p2 = scmp.lt.s32.totalorder %s8336_s29, %s9002_s0  ;;  %p8032_p4 = scmp.lt.s32.totalorder %s8030_s15, %s8025_s11 }
  0x49   : > { %p8028_p9 = pnand %p8027_p1, %p8026_p7 }
  0x4a   : > { %p8033_p6 = por %p8032_p4, %p8031_p2 }
  0x4b   : > { %p8029_p13 = pneg %p8028_p9 }
  0x4d   : > { %p8034_p12 = pnand %p8033_p6, %p8029_p13 }
  0x4f   : > { %8037 = shalt.err (!%p8034_p12)
}
  0x50   : > { %s8038_s2 = scalar_lea.vmem %s360_s18, 128  ;;  %s8164_s4 = smov [#allocation2]  }
  0x51   : > { %p8039_p0 = scmp.ne.s32.totalorder %s360_s18, %s8038_s2  ;;  %s8043_s27 = sshll.u32 %s8164_s4, 4  ;;  %s8044_s27 = int_to_ptr.vmem [resolvable:$false] %s8043_s27 }
  0x52   : > { %s8045_s22 = scalar_lea.vmem %s8044_s27, 256  ;;  %p8046_p7 = scmp.lt.s32.totalorder %s360_s18, %s8044_s27 }
  0x53   : > { %p8041_p5 = pnand %p8039_p0, %p8027_p1  ;;  %p8047_p9 = scmp.lt.s32.totalorder %s8045_s22, %s8038_s2 }
  0x55   : > { %p8042_p3 = pneg %p8041_p5  ;;  %p8048_p10 = por %p8047_p9, %p8046_p7 }
  0x57   : > { %p8049_p8 = pnand %p8048_p10, %p8042_p3 }
  0x59   : > { %8052 = shalt.err (!%p8049_p8)
}
  0x5a   : > { %7866 = dma.hbm_to_vmem [thread:$0]  (!%p8339_p11), %s8336_s29, 128, %s360_s18, %s349_s30  }
  0x5b   : > { %s366_s15 = sand.u32 1, %s8157_s16   ;;  %s370_s20 = scalar_lea.vmem [#allocation5], %s8331_s28 }
  0x5c   : > { %s377_s26 = sshll.u32 %s370_s20, 4  ;;  %s367_s23 = scalar_lea.sflag [#allocation6], %s366_s15  ;;  %s378_s26 = int_to_ptr.vmem [resolvable:$true] %s377_s26 }
  0x5d   : > { %s8053_s11 = scalar_lea.hbm %s8346_s6, 128  ;;  %s8058_s4 = scalar_lea.hbm %s9003_s1, 256 }
  0x5e   : > { %p8054_p13 = scmp.ne.s32.totalorder %s8346_s6, %s8053_s11  ;;  %p8059_p2 = scmp.lt.s32.totalorder %s8346_s6, %s9003_s1 }
  0x5f   : > { %p8060_p4 = scmp.lt.s32.totalorder %s8058_s4, %s8053_s11 }
  0x60   : > { %p8056_p8 = pnand %p8054_p13, %p8027_p1 }
  0x61   : > { %p8061_p6 = por %p8060_p4, %p8059_p2 }
  0x62   : > { %p8057_p10 = pneg %p8056_p8 }
  0x64   : > { %p8062_p12 = pnand %p8061_p6, %p8057_p10 }
  0x66   : > { %8065 = shalt.err (!%p8062_p12)
}
  0x67   : > { %s8066_s28 = scalar_lea.vmem %s378_s26, 128  ;;  %s8165_s29 = smov [#allocation5]  }
  0x68   : > { %p8067_p0 = scmp.ne.s32.totalorder %s378_s26, %s8066_s28  ;;  %s8071_s18 = sshll.u32 %s8165_s29, 4  ;;  %s8072_s18 = int_to_ptr.vmem [resolvable:$false] %s8071_s18 }
  0x69   : > { %s8073_s30 = scalar_lea.vmem %s8072_s18, 256  ;;  %p8074_p7 = scmp.lt.s32.totalorder %s378_s26, %s8072_s18 }
  0x6a   : > { %p8069_p5 = pnand %p8067_p0, %p8027_p1  ;;  %p8075_p9 = scmp.lt.s32.totalorder %s8073_s30, %s8066_s28 }
  0x6c   : > { %p8070_p3 = pneg %p8069_p5  ;;  %p8076_p13 = por %p8075_p9, %p8074_p7 }
  0x6e   : > { %p8077_p8 = pnand %p8076_p13, %p8070_p3 }
  0x70   : > { %8080 = shalt.err (!%p8077_p8)
}
  0x71   : > { %7869 = dma.hbm_to_vmem [thread:$0]  (!%p8339_p11), %s8346_s6, 128, %s378_s26, %s367_s23  }
  0x72   : > { %p9038_p10 = scmp.ne.s32.totalorder %s9028_s21, 0 }
  0x73   : > { %s8391_s15 = sand.u32 (!%p9038_p10), 1, %s8149_s14   ;;  %p9039_p1 = scmp.ne.s32.totalorder (!%p9038_p10), %s9025_s19, 0 }
  0x74   : > { %386 = sbr.rel (%p9038_p10) target bundleno = 3759 (0xeaf), region = 60  ;;  %s8394_s20 = sshll.u32 (!%p9038_p10), %s8391_s15, 3 }
  0x75   : > { %s389_s11 = scalar_lea.sflag (!%p9038_p10), [#allocation3], %s8391_s15  ;;  %s392_s12 = scalar_lea.vmem (!%p9038_p10), [#allocation2], %s8394_s20 }
  0x79   : > { %8124 = dma.done.wait (%p9039_p1), %s389_s11, 128  }
  0x7a   : > { %8126 = vsyncadd (%p9039_p1), %s389_s11, 4294967168  ;;  %s397_s6 = sand.u32 1, %s8252_s17   ;;  %s401_s24 = scalar_lea.vmem [#allocation5], %s8394_s20 }
  0x7b   : > { %s398_s21 = scalar_lea.sflag [#allocation6], %s397_s6 }
  0x7c   : > { %8128 = dma.done.wait (%p9039_p1), %s398_s21, 128  }
  0x7d   : > { %8130 = vsyncadd (%p9039_p1), %s398_s21, 4294967168  ;;  %p9040_p11 = scmp.eq.s32.totalorder %s8252_s17, 0 }
  0x7f   : > { %8132 = dma.done.wait (%p9040_p11), [#allocation6], 512   ;;  %p9041_p2 = pmov %p9040_p11 }
  0x81   : > { %8134 = vsyncadd (%p9041_p2), [#allocation6], 4294966784  ;;  %p9042_p4 = pmov %p9041_p2 }
  0x82   : > { %p9043_p6 = pmov %p9041_p2 }
  0x83   : > { %8136 = dma.done.wait (%p9042_p4), [#allocation9], 1024  }
  0x84   : > { %8138 = vsyncadd (%p9043_p6), [#allocation9], 4294966272  ;;  %v8166_v0 = vmov 0.0   ;;  %vm8167_vm0 = vmmov 0   ;;  %vm468_vm1 = vcmask 261120   ;;  %v460_v1 = vld [vmem:[#allocation7 + $0x18] sm:$0xff] }
  0x85   : > { %7343 = vmatprep.subr.mxu0 %v8166_v0  ;;  %7354 = vmatprep.subr.mxu1 %v8166_v0  ;;  %v459_v2 = vld [vmem:[#allocation7 + $0x10] sm:$0xff]  ;;  %v458_v3 = vld [vmem:[#allocation7 + $0x8] sm:$0xff]  ;;  %v8422_v4 = vand.u32 4294901760, %v460_v1  ;;  %v457_v7 = vld [vmem:[#allocation7] sm:$0xff]  ;;  %vm1464_vm2 = vcmask 64512   ;;  %s8168_s4 = smov 96  }
  0x86   : > { %7351 = vmatprep.mubr.msk.f32.mxu0 %vm8167_vm0, %v8166_v0  ;;  %7362 = vmatprep.mubr.msk.f32.mxu1 %vm8167_vm0, %v8166_v0  ;;  %v8424_v5 = vand.u32 4294901760, %v459_v2  ;;  %v8426_v6 = vand.u32 4294901760, %v458_v3  ;;  %v455_v8 = vld [vmem:[%s392_s12] sm:$0xff]  ;;  %v8430_v9 = vand.u32 4294901760, %v457_v7  ;;  %v456_v32 = vld [vmem:[%s401_s24] sm:$0xff]  ;;  %s8169_s27 = smov 120  }
  0x87   : > { %v470_v10 = vsel %vm468_vm1, %v455_v8, 0  ;;  %7344 = vmatpush3.msra.mxu0 %v8422_v4  ;;  %v577_v11 = vsub.f32 %v460_v1, %v8422_v4  ;;  %v960_v33 = vld [vmem:[#allocation8 + $0x18] sm:$0xff]  ;;  %v969_v34 = vsel %vm468_vm1, %v456_v32, 0  ;;  %v959_v36 = vld [vmem:[#allocation8 + $0x10] sm:$0xff]  ;;  %v958_v37 = vld [vmem:[#allocation8 + $0x8] sm:$0xff]  ;;  %s8170_s22 = smov 88  }
  0x88   : > { %v8435_v12 = vand.u32 4294901760, %v470_v10  ;;  %v8438_v13 = vsub.f32 %v459_v2, %v8424_v5  ;;  %v8441_v14 = vsub.f32 %v458_v3, %v8426_v6  ;;  %7345 = vmatprep.subr.mxu0 %v8166_v0  ;;  %v8445_v15 = vsub.f32 %v457_v7, %v8430_v9  ;;  %v957_v41 = vld [vmem:[#allocation8] sm:$0xff]  ;;  %s8171_s28 = smov 112   ;;  %s8172_s29 = smov 80  }
  0x89   : > { %7346 = vmatpush3.msra.mxu0 %v8424_v5  ;;  %v578_v16 = vand.u32 4294901760, %v577_v11  ;;  %v8483_v35 = vand.u32 4294901760, %v960_v33  ;;  %v8490_v38 = vand.u32 4294901760, %v969_v34  ;;  %v8493_v39 = vand.u32 4294901760, %v959_v36  ;;  %s8173_s18 = smov 104   ;;  %s8174_s30 = smov 72  }
  0x8a   : > { %v8449_v17 = vsub.f32 %v470_v10, %v8435_v12  ;;  %v585_v18 = vand.u32 4294901760, %v8438_v13  ;;  %v592_v19 = vand.u32 4294901760, %v8441_v14  ;;  %7347 = vmatprep.subr.mxu0 %v8166_v0  ;;  %v599_v20 = vand.u32 4294901760, %v8445_v15  ;;  %s7136_s26 = sshll.u32 %s8252_s17, 7  ;;  %s454_s23 = scalar_lea.vmem [#allocation11], %s8394_s20 }
  0x8b   : > { %7348 = vmatpush3.msra.mxu0 %v8426_v6  ;;  %v579_v21 = vsub.f32 %v577_v11, %v578_v16  ;;  %v8498_v40 = vsub.f32 %v960_v33, %v8483_v35  ;;  %v8501_v42 = vand.u32 4294901760, %v958_v37  ;;  %v8506_v43 = vsub.f32 %v969_v34, %v8490_v38  ;;  %s6992_s2 = sshll.u32 %s454_s23, 4  ;;  %p9044_p0 = scmp.ne.s32.totalorder %s9036_s25, 0  ;;  %s6993_s2 = int_to_ptr.vmem [resolvable:$true] %s6992_s2 }
  0x8c   : > { %v543_v22 = vand.u32 4294901760, %v8449_v17  ;;  %v586_v23 = vsub.f32 %v8438_v13, %v585_v18  ;;  %v593_v24 = vsub.f32 %v8441_v14, %v592_v19  ;;  %7349 = vmatprep.subr.mxu0 %v8166_v0  ;;  %v600_v28 = vsub.f32 %v8445_v15, %v599_v20 }
  0x8d   : > { %7350 = vmatpush3.msra.mxu0 %v8430_v9  ;;  %v580_v25 = vand.u32 4294901760, %v579_v21  ;;  %v8512_v44 = vsub.f32 %v959_v36, %v8493_v39  ;;  %v8514_v45 = vand.u32 4294901760, %v957_v41  ;;  %v1077_v46 = vand.u32 4294901760, %v8498_v40  ;;  %v7131_v21 = vld [vmem:[%s9007_s5] ss:$0 sm:$0xff] }
  0x8e   : > { %v544_v26 = vsub.f32 %v8449_v17, %v543_v22  ;;  %v587_v27 = vand.u32 4294901760, %v586_v23  ;;  %7365 = vmatprep.subr.mxu0 %v8166_v0  ;;  %v594_v30 = vand.u32 4294901760, %v593_v24  ;;  %v601_v31 = vand.u32 4294901760, %v600_v28 }
  0x8f   : > { %7355 = vmatpush3.msra.mxu1 %v580_v25  ;;  %v8522_v47 = vsub.f32 %v958_v37, %v8501_v42  ;;  %v1042_v48 = vand.u32 4294901760, %v8506_v43  ;;  %v8532_v49 = vsub.f32 %v957_v41, %v8514_v45  ;;  %v1084_v50 = vand.u32 4294901760, %v8512_v44 }
  0x90   : > { %v545_v29 = vand.u32 4294901760, %v544_v26  ;;  %7356 = vmatprep.subr.mxu1 %v8166_v0  ;;  %v1078_v51 = vsub.f32 %v8498_v40, %v1077_v46 }
  0x91   : > { %7357 = vmatpush3.msra.mxu1 %v587_v27  ;;  %v1091_v52 = vand.u32 4294901760, %v8522_v47  ;;  %v1043_v53 = vsub.f32 %v8506_v43, %v1042_v48  ;;  %v1085_v54 = vsub.f32 %v8512_v44, %v1084_v50  ;;  %v1098_v55 = vand.u32 4294901760, %v8532_v49 }
  0x92   : > { %7352 = vmatmul.mubr.f32.vlgmr.msra.gmra.mxu0 %v545_v29  ;;  %7358 = vmatprep.subr.mxu1 %v8166_v0  ;;  %v1079_v56 = vand.u32 4294901760, %v1078_v51 }
  0x93   : > { %7366 = vmatpush3.msra.mxu0 %v577_v11  ;;  %7359 = vmatpush3.msra.mxu1 %v594_v30  ;;  %v1092_v57 = vsub.f32 %v8522_v47, %v1091_v52  ;;  %v1044_v58 = vand.u32 4294901760, %v1043_v53  ;;  %v1086_v59 = vand.u32 4294901760, %v1085_v54  ;;  %v1099_v60 = vsub.f32 %v8532_v49, %v1098_v55 }
  0x94   : > { %7367 = vmatprep.subr.mxu0 %v8166_v0  ;;  %7360 = vmatprep.subr.mxu1 %v8166_v0 }
  0x95   : > { %7368 = vmatpush3.msra.mxu0 %v8438_v13  ;;  %7361 = vmatpush3.msra.mxu1 %v601_v31  ;;  %v1093_v61 = vand.u32 4294901760, %v1092_v57  ;;  %v1100_v62 = vand.u32 4294901760, %v1099_v60 }
  0x96   : > { %7369 = vmatprep.subr.mxu0 %v8166_v0  ;;  %7363 = vmatmul.mubr.f32.vlgmr.msra.gmra.mxu1 %v8435_v12 }
  0x97   : > { %7370 = vmatpush3.msra.mxu0 %v8441_v14  ;;  %7376 = vmatprep.subr.mxu1 %v8166_v0 }
  0x98   : > { %7371 = vmatprep.subr.mxu0 %v8166_v0  ;;  %7377 = vmatpush3.msra.mxu1 %v8422_v4 }
  0x99   : > { %7372 = vmatpush3.msra.mxu0 %v8445_v15  ;;  %7373 = vmatprep.mubr.msk.f32.mxu0 %vm8167_vm0, %v8166_v0 }
  0x9a   : > { %7378 = vmatprep.subr.mxu1 %v8166_v0  ;;  %7387 = vmatprep.subr.mxu0 %v8166_v0 }
  0x9b   : > { %7374 = vmatmul.mubr.f32.vlgmr.msra.gmra.mxu0 %v8449_v17  ;;  %7379 = vmatpush3.msra.mxu1 %v8424_v5 }
  0x9c   : > { %7388 = vmatpush3.msra.mxu0 %v578_v16  ;;  %7380 = vmatprep.subr.mxu1 %v8166_v0 }
  0x9d   : > { %7389 = vmatprep.subr.mxu0 %v8166_v0  ;;  %7381 = vmatpush3.msra.mxu1 %v8426_v6 }
  0x9e   : > { %7390 = vmatpush3.msra.mxu0 %v585_v18  ;;  %7382 = vmatprep.subr.mxu1 %v8166_v0 }
  0x9f   : > { %7391 = vmatprep.subr.mxu0 %v8166_v0  ;;  %7383 = vmatpush3.msra.mxu1 %v8430_v9 }
  0xa0   : > { %7384 = vmatprep.mubr.msk.f32.mxu1 %vm8167_vm0, %v8166_v0  ;;  %7392 = vmatpush3.msra.mxu0 %v592_v19 }
  0xa1   : > { %7385 = vmatmul.mubr.f32.vlgmr.msra.gmra.mxu1 %v543_v22  ;;  %7393 = vmatprep.subr.mxu0 %v8166_v0 }
  0xa2   : > { %7398 = vmatprep.subr.mxu1 %v8166_v0  ;;  %7394 = vmatpush3.msra.mxu0 %v599_v20 }
  0xa3   : > { %7395 = vmatprep.mubr.msk.f32.mxu0 %vm8167_vm0, %v8166_v0  ;;  %7399 = vmatpush3.msra.mxu1 %v8422_v4 }
  0xa4   : > { %7396 = vmatmul.mubr.f32.vlgmr.msra.gmra.mxu0 %v8435_v12  ;;  %7400 = vmatprep.subr.mxu1 %v8166_v0 }
  0xa5   : > { %7409 = vmatprep.subr.mxu0 %v8166_v0  ;;  %7401 = vmatpush3.msra.mxu1 %v8424_v5 }
  0xa6   : > { %7410 = vmatpush3.msra.mxu0 %v8483_v35  ;;  %7402 = vmatprep.subr.mxu1 %v8166_v0 }
  0xa7   : > { %7411 = vmatprep.subr.mxu0 %v8166_v0  ;;  %7403 = vmatpush3.msra.mxu1 %v8426_v6 }
  0xa8   : > { %7412 = vmatpush3.msra.mxu0 %v8493_v39  ;;  %7404 = vmatprep.subr.mxu1 %v8166_v0 }
  0xa9   : > { %7413 = vmatprep.subr.mxu0 %v8166_v0  ;;  %7405 = vmatpush3.msra.mxu1 %v8430_v9  ;;  %v7130_v9 = vld [vmem:[%s9005_s3] ss:$0 sm:$0xff] }
  0xaa   : > { %7406 = vmatprep.mubr.msk.f32.mxu1 %vm8167_vm0, %v8166_v0  ;;  %7414 = vmatpush3.msra.mxu0 %v8501_v42 }
  0xab   : > { %7407 = vmatmul.mubr.f32.vlgmr.msra.gmra.mxu1 %v8435_v12  ;;  %7415 = vmatprep.subr.mxu0 %v8166_v0 }
  0xac   : > { %7420 = vmatprep.subr.mxu1 %v8166_v0  ;;  %7416 = vmatpush3.msra.mxu0 %v8514_v45 }
  0xad   : > { %7421 = vmatpush3.msra.mxu1 %v1079_v56  ;;  %7417 = vmatprep.mubr.msk.f32.mxu0 %vm8167_vm0, %v8166_v0 }
  0xae   : > { %7422 = vmatprep.subr.mxu1 %v8166_v0  ;;  %7431 = vmatprep.subr.mxu0 %v8166_v0 }
  0xaf   : > { %7418 = vmatmul.mubr.f32.vlgmr.msra.gmra.mxu0 %v1044_v58  ;;  %7423 = vmatpush3.msra.mxu1 %v1086_v59 }
  0xb0   : > { %7432 = vmatpush3.msra.mxu0 %v8498_v40  ;;  %7424 = vmatprep.subr.mxu1 %v8166_v0 }
  0xb1   : > { %7433 = vmatprep.subr.mxu0 %v8166_v0  ;;  %7425 = vmatpush3.msra.mxu1 %v1093_v61 }
  0xb2   : > { %7434 = vmatpush3.msra.mxu0 %v8512_v44  ;;  %7426 = vmatprep.subr.mxu1 %v8166_v0 }
  0xb3   : > { %7435 = vmatprep.subr.mxu0 %v8166_v0  ;;  %7427 = vmatpush3.msra.mxu1 %v1100_v62 }
  0xb4   : > { %7428 = vmatprep.mubr.msk.f32.mxu1 %vm8167_vm0, %v8166_v0  ;;  %7436 = vmatpush3.msra.mxu0 %v8522_v47 }
  0xb5   : > { %7429 = vmatmul.mubr.f32.vlgmr.msra.gmra.mxu1 %v8490_v38  ;;  %7437 = vmatprep.subr.mxu0 %v8166_v0 }
  0xb6   : > { %7442 = vmatprep.subr.mxu1 %v8166_v0  ;;  %7438 = vmatpush3.msra.mxu0 %v8532_v49 }
  0xb7   : > { %7443 = vmatpush3.msra.mxu1 %v8483_v35  ;;  %7439 = vmatprep.mubr.msk.f32.mxu0 %vm8167_vm0, %v8166_v0 }
  0xb8   : > { %7444 = vmatprep.subr.mxu1 %v8166_v0  ;;  %7453 = vmatprep.subr.mxu0 %v8166_v0 }
  0xb9   : > { %7440 = vmatmul.mubr.f32.vlgmr.msra.gmra.mxu0 %v8506_v43  ;;  %7445 = vmatpush3.msra.mxu1 %v8493_v39 }
  0xba   : > { %7454 = vmatpush3.msra.mxu0 %v1077_v46  ;;  %7446 = vmatprep.subr.mxu1 %v8166_v0 }
  0xbb   : > { %7455 = vmatprep.subr.mxu0 %v8166_v0  ;;  %7447 = vmatpush3.msra.mxu1 %v8501_v42 }
  0xbc   : > { %7456 = vmatpush3.msra.mxu0 %v1084_v50  ;;  %7448 = vmatprep.subr.mxu1 %v8166_v0 }
  0xbd   : > { %7457 = vmatprep.subr.mxu0 %v8166_v0  ;;  %7449 = vmatpush3.msra.mxu1 %v8514_v45 }
  0xbe   : > { %7450 = vmatprep.mubr.msk.f32.mxu1 %vm8167_vm0, %v8166_v0  ;;  %7458 = vmatpush3.msra.mxu0 %v1091_v52 }
  0xbf   : > { %7451 = vmatmul.mubr.f32.vlgmr.msra.gmra.mxu1 %v1042_v48  ;;  %7459 = vmatprep.subr.mxu0 %v8166_v0 }
  0xc0   : > { %7464 = vmatprep.subr.mxu1 %v8166_v0  ;;  %7460 = vmatpush3.msra.mxu0 %v1098_v55 }
  0xc1   : > { %7461 = vmatprep.mubr.msk.f32.mxu0 %vm8167_vm0, %v8166_v0  ;;  %7465 = vmatpush3.msra.mxu1 %v8483_v35 }
  0xc2   : > { %7462 = vmatmul.mubr.f32.vlgmr.msra.gmra.mxu0 %v8490_v38  ;;  %7466 = vmatprep.subr.mxu1 %v8166_v0 }
  0xc3   : > { %7472 = vmatprep.mubr.msk.f32.mxu1 %vm8167_vm0, %v8166_v0  ;;  %7467 = vmatpush3.msra.mxu1 %v8493_v39 }
  0xc4   : > { %7475 = vmatprep.subr.mxu0 %v8166_v0  ;;  %7468 = vmatprep.subr.mxu1 %v8166_v0 }
  0xc5   : > { %7477 = vmatprep.mubr.msk.f32.mxu0 %vm8167_vm0, %v8166_v0  ;;  %7469 = vmatpush3.msra.mxu1 %v8501_v42 }
  0xc6   : > { %7470 = vmatprep.subr.mxu1 %v8166_v0 }
  0xc7   : > { %7471 = vmatpush3.msra.mxu1 %v8514_v45 }
  0xc8   : > { %7473 = vmatmul.mubr.f32.vlgmr.msra.gmra.mxu1 %v8490_v38  ;;  %7480 = vmatprep.subr.mxu1 %v8166_v0 }
  0xc9   : > { %7482 = vmatprep.mubr.msk.f32.mxu1 %vm8167_vm0, %v8166_v0 }
 0x152   : > { %v547_v63 = vpop.f32.mrf.mxu0 }
 0x153   : > { %v548_v11 = vadd.f32 %v7130_v9, %v547_v63 }
 0x154   : > { %v7353_v1 = vpop.f32.mrf.mxu0 }
 0x156   : > { %v638_v2 = vpop.f32.mrf.mxu1 }
 0x157   : > { %v639_v13 = vadd.f32 %v638_v2, %v548_v11  ;;  %v1460_v2 = vlaneseq }
 0x158   : > { %v7364_v3 = vpop.f32.mrf.mxu1 }
 0x15b   : > { %v718_v4 = vpop.f32.mrf.mxu0 }
 0x15c   : > { %v719_v16 = vadd.f32 %v718_v4, %v639_v13 }
 0x15d   : > { %v7375_v5 = vpop.f32.mrf.mxu0 }
 0x161   : > { %v795_v6 = vpop.f32.mrf.mxu1 }
 0x162   : > { %v796_v18 = vadd.f32 %v795_v6, %v719_v16 }
 0x163   : > { %v7386_v7 = vpop.f32.mrf.mxu1 }
 0x164   : > { %v878_v8 = vpop.f32.mrf.mxu0  ;;  %v8668_v7 = vshrl.u32 %v1460_v2, 7 }
 0x165   : > { %v879_v20 = vadd.f32 %v878_v8, %v796_v18  ;;  %v8670_v8 = vand.u32 127, %v1460_v2 }
 0x166   : > { %v7397_v10 = vpop.f32.mrf.mxu0 }
 0x167   : > { %vm1918_vm3 = vcmp.le.s32.totalorder %v8670_v8, %v8668_v7 }
 0x16b   : > { %v953_v12 = vpop.f32.mrf.mxu1 }
 0x16c   : > { %v8627_v23 = vadd.f32 %v953_v12, %v879_v20 }
 0x16d   : > { %v7408_v14 = vpop.f32.mrf.mxu1 }
 0x16e   : > { %v1466_v27 = vsel %vm1464_vm2, %v8627_v23, 0 }
 0x16f   : > { %v1046_v15 = vpop.f32.mrf.mxu0  ;;  %v1537_v30 = vand.u32 4294901760, %v1466_v27 }
 0x170   : > { %v1047_v25 = vadd.f32 %v7131_v21, %v1046_v15 }
 0x171   : > { %v7419_v17 = vpop.f32.mrf.mxu0  ;;  %v1538_v34 = vsub.f32 %v1466_v27, %v1537_v30 }
 0x173   : > { %v1539_v38 = vand.u32 4294901760, %v1538_v34 }
 0x175   : > { %v1137_v19 = vpop.f32.mrf.mxu1  ;;  %v1540_v43 = vsub.f32 %v1538_v34, %v1539_v38 }
 0x176   : > { %v1138_v28 = vadd.f32 %v1137_v19, %v1047_v25 }
 0x177   : > { %v7430_v22 = vpop.f32.mrf.mxu1  ;;  %v1541_v46 = vand.u32 4294901760, %v1540_v43 }
 0x179   : > { %v1217_v24 = vpop.f32.mrf.mxu0 }
 0x17a   : > { %v1218_v32 = vadd.f32 %v1217_v24, %v1138_v28 }
 0x17b   : > { %v7441_v26 = vpop.f32.mrf.mxu0 }
 0x17f   : > { %v1294_v29 = vpop.f32.mrf.mxu1 }
 0x180   : > { %v1295_v35 = vadd.f32 %v1294_v29, %v1218_v32 }
 0x181   : > { %v7452_v31 = vpop.f32.mrf.mxu1 }
 0x182   : > { %v1377_v33 = vpop.f32.mrf.mxu0 }
 0x183   : > { %v1378_v37 = vadd.f32 %v1377_v33, %v1295_v35 }
 0x184   : > { %v7463_v36 = vpop.f32.mrf.mxu0 }
 0x188   : > { %v1452_v39 = vpop.f32.mrf.mxu1 }
 0x189   : > { %v8631_v40 = vadd.f32 %v1452_v39, %v1378_v37 }
 0x18a   : > { %v7474_v41 = vpop.f32.mrf.mxu1 }
 0x18b   : > { %1931 = vrot.lane.b32.xlu1 %v8631_v40, %s8168_s4  ;;  %v1469_v42 = vsel %vm1464_vm2, %v8631_v40, 0 }
 0x18c   : > { %v1502_v44 = vand.u32 4294901760, %v1469_v42 }
 0x18e   : > { %7476 = vmatpush3.xpose.msra.mxu0 %v1502_v44  ;;  %v1579_v45 = vsub.f32 %v1469_v42, %v1502_v44 }
 0x18f   : > { %2385 = vrot.lane.b32.xlu1 %v8631_v40, %s8169_s27  ;;  %7485 = vmatprep.subr.mxu0 %v8166_v0 }
 0x190   : > { %v1580_v47 = vand.u32 4294901760, %v1579_v45 }
 0x191   : > { %7478 = vmatmul.mubr.f32.vlgmr.msra.gmra.mxu0 %v1541_v46 }
 0x192   : > { %7486 = vmatpush3.xpose.msra.mxu0 %v1579_v45  ;;  %7487 = vmatprep.mubr.msk.f32.mxu0 %vm8167_vm0, %v8166_v0  ;;  %v1581_v48 = vsub.f32 %v1579_v45, %v1580_v47 }
 0x193   : > { %7495 = vmatprep.subr.mxu0 %v8166_v0 }
 0x194   : > { %v1582_v49 = vand.u32 4294901760, %v1581_v48 }
 0x195   : > { %7488 = vmatmul.mubr.f32.vlgmr.msra.gmra.mxu0 %v1538_v34 }
 0x196   : > { %7481 = vmatpush3.xpose.msra.mxu1 %v1582_v49  ;;  %7496 = vmatpush3.xpose.msra.mxu0 %v1580_v47 }
 0x197   : > { %7497 = vmatprep.mubr.msk.f32.mxu0 %vm8167_vm0, %v8166_v0  ;;  %7490 = vmatprep.subr.mxu1 %v8166_v0 }
 0x198   : > { %7505 = vmatprep.subr.mxu0 %v8166_v0 }
 0x199   : > { %7483 = vmatmul.mubr.f32.vlgmr.msra.gmra.mxu1 %v1537_v30  ;;  %7498 = vmatmul.mubr.f32.vlgmr.msra.gmra.mxu0 %v1537_v30 }
 0x19a   : > { %7491 = vmatpush3.xpose.msra.mxu1 %v1502_v44  ;;  %7492 = vmatprep.mubr.msk.f32.mxu1 %vm8167_vm0, %v8166_v0 }
 0x19b   : > { %7500 = vmatprep.subr.mxu1 %v8166_v0  ;;  %7507 = vmatprep.mubr.msk.f32.mxu0 %vm8167_vm0, %v8166_v0 }
 0x19d   : > { %7493 = vmatmul.mubr.f32.vlgmr.msra.gmra.mxu1 %v1539_v38 }
 0x19e   : > { %7501 = vmatpush3.xpose.msra.mxu1 %v1502_v44  ;;  %7502 = vmatprep.mubr.msk.f32.mxu1 %vm8167_vm0, %v8166_v0 }
 0x19f   : > { %7510 = vmatprep.subr.mxu1 %v8166_v0 }
 0x1a1   : > { %7503 = vmatmul.mubr.f32.vlgmr.msra.gmra.mxu1 %v1537_v30 }
 0x1a2   : > { %7512 = vmatprep.mubr.msk.f32.mxu1 %vm8167_vm0, %v8166_v0 }
 0x1fd   : > { %v1932_v50 = vpop.permute.xlu1 %1931 }
 0x1fe   : > { %v8656_v51 = vand.u32 4294901760, %v1932_v50 }
 0x200   : > { %v8659_v52 = vsub.f32 %v1932_v50, %v8656_v51  ;;  %7506 = vmatpush3.msra.mxu0 %v8656_v51 }
 0x201   : > { %7515 = vmatprep.subr.mxu0 %v8166_v0  ;;  %v2386_v22 = vpop.permute.xlu1 %2385 }
 0x202   : > { %v2046_v53 = vand.u32 4294901760, %v8659_v52  ;;  %v2389_v24 = vsel %vm1464_vm2, %v2386_v22, 0 }
 0x203   : > { %v2422_v25 = vand.u32 4294901760, %v2389_v24 }
 0x204   : > { %v2047_v54 = vsub.f32 %v8659_v52, %v2046_v53 }
 0x205   : > { %v2499_v27 = vsub.f32 %v2389_v24, %v2422_v25 }
 0x206   : > { %v2048_v55 = vand.u32 4294901760, %v2047_v54 }
 0x207   : > { %v2500_v32 = vand.u32 4294901760, %v2499_v27 }
 0x208   : > { %7511 = vmatpush3.msra.mxu1 %v2048_v55 }
 0x209   : > { %7520 = vmatprep.subr.mxu1 %v8166_v0  ;;  %v2501_v37 = vsub.f32 %v2499_v27, %v2500_v32 }
 0x20b   : > { %v2502_v42 = vand.u32 4294901760, %v2501_v37 }
 0x251   : > { %v1543_v56 = vpop.f32.mrf.mxu0 }
 0x253   : > { %v7479_v57 = vpop.f32.mrf.mxu0 }
 0x255   : > { %v1693_v58 = vpop.f32.mrf.mxu0 }
 0x257   : > { %v7489_v59 = vpop.f32.mrf.mxu0 }
 0x259   : > { %v1619_v60 = vpop.f32.mrf.mxu1  ;;  %v1841_v61 = vpop.f32.mrf.mxu0 }
 0x25a   : > { %v1620_v62 = vadd.f32 %v1619_v60, %v1543_v56 }
 0x25b   : > { %v7484_v63 = vpop.f32.mrf.mxu1  ;;  %v7499_v1 = vpop.f32.mrf.mxu0 }
 0x25c   : > { %v1694_v3 = vadd.f32 %v1693_v58, %v1620_v62 }
 0x25d   : > { %v1767_v4 = vpop.f32.mrf.mxu1 }
 0x25e   : > { %v1768_v5 = vadd.f32 %v1767_v4, %v1694_v3 }
 0x25f   : > { %v7494_v6 = vpop.f32.mrf.mxu1 }
 0x260   : > { %v1842_v9 = vadd.f32 %v1841_v61, %v1768_v5 }
 0x261   : > { %v1913_v10 = vpop.f32.mrf.mxu1 }
 0x262   : > { %v1914_v11 = vadd.f32 %v1913_v10, %v1842_v9 }
 0x263   : > { %v7504_v12 = vpop.f32.mrf.mxu1 }
 0x264   : > { %v1917_v13 = vmul.f32 0.35355338, %v1914_v11 }
 0x266   : > { %v1919_v14 = vsel %vm1918_vm3, %v1917_v13, -1e+30 }
 0x267   : > { %v1920_v15 = vsel %vm1464_vm2, %v1919_v14, -inf }
 0x268   : > { %1921 = vmax.xlane.f32.xlu0 %v1920_v15 }
 0x2f1   : > { %v1922_v16 = vpop.xlane.xlu0 %1921 }
 0x2f2   : > { %v1923_v17 = vsub.f32 %v1919_v14, %v1922_v16 }
 0x2f4   : > { %v1924_v18 = vmul.f32 1.442695, %v1923_v17 }
 0x2f6   : > { %7928 = vpow2.f32 %v1924_v18 }
 0x303   : > { %v7929_v19 = vpop.eup %7928 }
 0x304   : > { %v1926_v20 = vsel %vm1464_vm2, %v7929_v19, 0.0 }
 0x305   : > { %1927 = vadd.xlane.f32.xlu0 %v1926_v20 }
 0x31b   : > { %2383 = vrot.lane.b32.xlu0 %v8627_v23, %s8169_s27 }
 0x38e   : > { %v1928_v21 = vpop.xlane.xlu0 %1927 }
 0x38f   : > { %7930 = vrcp.f32 %v1928_v21 }
 0x392   : > { %v2384_v29 = vpop.permute.xlu0 %2383 }
 0x393   : > { %v2387_v33 = vsel %vm1464_vm2, %v2384_v29, 0 }
 0x394   : > { %v2457_v35 = vand.u32 4294901760, %v2387_v33 }
 0x396   : > { %v2458_v39 = vsub.f32 %v2387_v33, %v2457_v35 }
 0x398   : > { %v2459_v43 = vand.u32 4294901760, %v2458_v39 }
 0x39a   : > { %v2460_v44 = vsub.f32 %v2458_v39, %v2459_v43 }
 0x39c   : > { %v7931_v26 = vpop.eup %7930  ;;  %v2461_v45 = vand.u32 4294901760, %v2460_v44  ;;  %v1457_v44 = vld [vmem:[#allocation10 + $0x8] sm:$0xff] }
 0x39d   : > { %v1930_v28 = vmul.f32 %v7931_v26, %v7929_v19 }
 0x39f   : > { %v1935_v30 = vsel %vm1464_vm2, %v1930_v28, 0 }
 0x3a0   : > { %v2003_v31 = vand.u32 4294901760, %v1935_v30 }
 0x3a2   : > { %v2004_v34 = vsub.f32 %v1935_v30, %v2003_v31  ;;  %7513 = vmatmul.mubr.f32.vlgmr.msra.gmra.mxu1 %v2003_v31 }
 0x3a3   : > { %7521 = vmatpush3.msra.mxu1 %v8656_v51  ;;  %7522 = vmatprep.mubr.msk.f32.mxu1 %vm8167_vm0, %v8166_v0 }
 0x3a4   : > { %7530 = vmatprep.subr.mxu1 %v8166_v0  ;;  %v2005_v36 = vand.u32 4294901760, %v2004_v34 }
 0x3a6   : > { %7523 = vmatmul.mubr.f32.vlgmr.msra.gmra.mxu1 %v2005_v36  ;;  %v2006_v38 = vsub.f32 %v2004_v34, %v2005_v36 }
 0x3a7   : > { %7531 = vmatpush3.msra.mxu1 %v8656_v51  ;;  %7532 = vmatprep.mubr.msk.f32.mxu1 %vm8167_vm0, %v8166_v0 }
 0x3a8   : > { %7540 = vmatprep.subr.mxu1 %v8166_v0  ;;  %v2007_v41 = vand.u32 4294901760, %v2006_v38 }
 0x3aa   : > { %7508 = vmatmul.mubr.f32.vlgmr.msra.gmra.mxu0 %v2007_v41  ;;  %7533 = vmatmul.mubr.f32.vlgmr.msra.gmra.mxu1 %v2003_v31 }
 0x3ab   : > { %7516 = vmatpush3.msra.mxu0 %v8659_v52  ;;  %7541 = vmatpush3.xpose.msra.mxu1 %v2502_v42 }
 0x3ac   : > { %7517 = vmatprep.mubr.msk.f32.mxu0 %vm8167_vm0, %v8166_v0  ;;  %7525 = vmatprep.subr.mxu0 %v8166_v0 }
 0x3ad   : > { %7542 = vmatprep.mubr.msk.f32.mxu1 %vm8167_vm0, %v8166_v0  ;;  %7550 = vmatprep.subr.mxu1 %v8166_v0 }
 0x3ae   : > { %7518 = vmatmul.mubr.f32.vlgmr.msra.gmra.mxu0 %v2004_v34  ;;  %7543 = vmatmul.mubr.f32.vlgmr.msra.gmra.mxu1 %v2457_v35 }
 0x3af   : > { %7526 = vmatpush3.msra.mxu0 %v2046_v53  ;;  %7551 = vmatpush3.xpose.msra.mxu1 %v2422_v25 }
 0x3b0   : > { %7527 = vmatprep.mubr.msk.f32.mxu0 %vm8167_vm0, %v8166_v0  ;;  %7535 = vmatprep.subr.mxu0 %v8166_v0 }
 0x3b1   : > { %7552 = vmatprep.mubr.msk.f32.mxu1 %vm8167_vm0, %v8166_v0  ;;  %7560 = vmatprep.subr.mxu1 %v8166_v0 }
 0x3b2   : > { %7528 = vmatmul.mubr.f32.vlgmr.msra.gmra.mxu0 %v2003_v31  ;;  %7553 = vmatmul.mubr.f32.vlgmr.msra.gmra.mxu1 %v2459_v43 }
 0x3b3   : > { %7536 = vmatpush3.xpose.msra.mxu0 %v2422_v25  ;;  %7561 = vmatpush3.xpose.msra.mxu1 %v2422_v25 }
 0x3b4   : > { %7537 = vmatprep.mubr.msk.f32.mxu0 %vm8167_vm0, %v8166_v0  ;;  %7545 = vmatprep.subr.mxu0 %v8166_v0 }
 0x3b5   : > { %7562 = vmatprep.mubr.msk.f32.mxu1 %vm8167_vm0, %v8166_v0  ;;  %7570 = vmatprep.subr.mxu1 %v8166_v0 }
 0x3b6   : > { %7538 = vmatmul.mubr.f32.vlgmr.msra.gmra.mxu0 %v2461_v45  ;;  %7563 = vmatmul.mubr.f32.vlgmr.msra.gmra.mxu1 %v2457_v35  ;;  %v3336_v45 = vand.u32 4294901760, %v1457_v44 }
 0x3b7   : > { %7546 = vmatpush3.xpose.msra.mxu0 %v2499_v27  ;;  %7547 = vmatprep.mubr.msk.f32.mxu0 %vm8167_vm0, %v8166_v0 }
 0x3b8   : > { %7555 = vmatprep.subr.mxu0 %v8166_v0  ;;  %7572 = vmatprep.mubr.msk.f32.mxu1 %vm8167_vm0, %v8166_v0 }
 0x3ba   : > { %7548 = vmatmul.mubr.f32.vlgmr.msra.gmra.mxu0 %v2458_v39 }
 0x3bb   : > { %7556 = vmatpush3.xpose.msra.mxu0 %v2500_v32  ;;  %7557 = vmatprep.mubr.msk.f32.mxu0 %vm8167_vm0, %v8166_v0 }
 0x3bc   : > { %7565 = vmatprep.subr.mxu0 %v8166_v0 }
 0x3be   : > { %7558 = vmatmul.mubr.f32.vlgmr.msra.gmra.mxu0 %v2457_v35 }
 0x3bf   : > { %7567 = vmatprep.mubr.msk.f32.mxu0 %vm8167_vm0, %v8166_v0 }
 0x462   : > { %v2085_v46 = vpop.f32.mrf.mxu1 }
 0x464   : > { %v7514_v47 = vpop.f32.mrf.mxu1 }
 0x466   : > { %v2233_v48 = vpop.f32.mrf.mxu1 }
 0x468   : > { %v7524_v49 = vpop.f32.mrf.mxu1 }
 0x46a   : > { %v2009_v50 = vpop.f32.mrf.mxu0  ;;  %v2379_v51 = vpop.f32.mrf.mxu1 }
 0x46b   : > { %v2086_v52 = vadd.f32 %v2085_v46, %v2009_v50  ;;  %v8752_v46 = vsub.f32 %v1457_v44, %v3336_v45 }
 0x46c   : > { %v7509_v53 = vpop.f32.mrf.mxu0  ;;  %v7534_v54 = vpop.f32.mrf.mxu1 }
 0x46d   : > { %v3414_v47 = vand.u32 4294901760, %v8752_v46 }
 0x46e   : > { %v2159_v55 = vpop.f32.mrf.mxu0  ;;  %v2539_v56 = vpop.f32.mrf.mxu1 }
 0x46f   : > { %v2160_v57 = vadd.f32 %v2159_v55, %v2086_v52 }
 0x470   : > { %v7519_v58 = vpop.f32.mrf.mxu0  ;;  %v7544_v59 = vpop.f32.mrf.mxu1 }
 0x471   : > { %v2234_v60 = vadd.f32 %v2233_v48, %v2160_v57  ;;  %v3415_v48 = vsub.f32 %v8752_v46, %v3414_v47  ;;  %v1456_v59 = vld [vmem:[#allocation10] sm:$0xff] }
 0x472   : > { %v2307_v61 = vpop.f32.mrf.mxu0  ;;  %v2687_v62 = vpop.f32.mrf.mxu1 }
 0x473   : > { %v2308_v63 = vadd.f32 %v2307_v61, %v2234_v60  ;;  %v3416_v49 = vand.u32 4294901760, %v3415_v48 }
 0x474   : > { %v7529_v1 = vpop.f32.mrf.mxu0  ;;  %v7554_v2 = vpop.f32.mrf.mxu1 }
 0x475   : > { %v8723_v3 = vadd.f32 %v2379_v51, %v2308_v63  ;;  %v3785_v63 = vand.u32 4294901760, %v1456_v59 }
 0x476   : > { %v2463_v4 = vpop.f32.mrf.mxu0  ;;  %v2833_v5 = vpop.f32.mrf.mxu1 }
 0x477   : > { %v2540_v10 = vadd.f32 %v2539_v56, %v2463_v4 }
 0x478   : > { %v7539_v6 = vpop.f32.mrf.mxu0  ;;  %v7564_v9 = vpop.f32.mrf.mxu1 }
 0x479   : > { %v8758_v6 = vsub.f32 %v1456_v59, %v3785_v63 }
 0x47a   : > { %v2613_v11 = vpop.f32.mrf.mxu0 }
 0x47b   : > { %v2614_v12 = vadd.f32 %v2613_v11, %v2540_v10 }
 0x47c   : > { %v7549_v13 = vpop.f32.mrf.mxu0 }
 0x47d   : > { %v2688_v14 = vadd.f32 %v2687_v62, %v2614_v12  ;;  %v3863_v13 = vand.u32 4294901760, %v8758_v6 }
 0x47e   : > { %v2761_v15 = vpop.f32.mrf.mxu0 }
 0x47f   : > { %v2762_v16 = vadd.f32 %v2761_v15, %v2688_v14  ;;  %v3752_v14 = vsel %vm1464_vm2, %v8723_v3, 0 }
 0x480   : > { %v7559_v17 = vpop.f32.mrf.mxu0 }
 0x481   : > { %v2834_v18 = vadd.f32 %v2833_v5, %v2762_v16  ;;  %v8767_v17 = vand.u32 4294901760, %v3752_v14 }
 0x483   : > { %v2837_v19 = vmul.f32 0.35355338, %v2834_v18 }
 0x485   : > { %v2838_v20 = vsel %vm1918_vm3, %v2837_v19, -1e+30  ;;  %v3864_v19 = vsub.f32 %v8758_v6, %v3863_v13 }
 0x486   : > { %v2839_v21 = vsel %vm1464_vm2, %v2838_v20, -inf }
 0x487   : > { %2840 = vmax.xlane.f32.xlu1 %v2839_v21  ;;  %v3821_v21 = vsub.f32 %v3752_v14, %v8767_v17 }
 0x498   : > { %2850 = vrot.lane.b32.xlu1 %v8631_v40, %s8170_s22  ;;  %s6990_s22 = scalar_lea.hbm %s9012_s10, %s7136_s26 }
 0x49c   : > { %4200 = vrot.lane.b32.xlu1 %v8627_v23, %s8171_s28 }
 0x510   : > { %v2841_v22 = vpop.xlane.xlu1 %2840 }
 0x511   : > { %v2842_v24 = vsub.f32 %v2838_v20, %v2841_v22 }
 0x513   : > { %v2843_v25 = vmul.f32 1.442695, %v2842_v24  ;;  %v3865_v24 = vand.u32 4294901760, %v3864_v19 }
 0x514   : > { %v2851_v26 = vpop.permute.xlu1 %2850 }
 0x515   : > { %7932 = vpow2.f32 %v2843_v25  ;;  %v2887_v27 = vand.u32 4294901760, %v2851_v26 }
 0x517   : > { %v2964_v28 = vsub.f32 %v2851_v26, %v2887_v27  ;;  %7566 = vmatpush3.msra.mxu0 %v2887_v27 }
 0x518   : > { %7575 = vmatprep.subr.mxu0 %v8166_v0  ;;  %v4201_v26 = vpop.permute.xlu1 %4200 }
 0x519   : > { %v2965_v29 = vand.u32 4294901760, %v2964_v28 }
 0x51b   : > { %v2966_v30 = vsub.f32 %v2964_v28, %v2965_v29 }
 0x51d   : > { %v2967_v31 = vand.u32 4294901760, %v2966_v30 }
 0x51f   : > { %7571 = vmatpush3.msra.mxu1 %v2967_v31 }
 0x520   : > { %7580 = vmatprep.subr.mxu1 %v8166_v0 }
 0x522   : > { %v7933_v32 = vpop.eup %7932 }
 0x523   : > { %v2845_v33 = vsel %vm1464_vm2, %v7933_v32, 0.0 }
 0x524   : > { %2846 = vadd.xlane.f32.xlu0 %v2845_v33 }
 0x53a   : > { %4202 = vrot.lane.b32.xlu0 %v8631_v40, %s8171_s28  ;;  %s6979_s28 = scalar_lea.sflag [#allocation4], %s8391_s15 }
 0x5ad   : > { %v2847_v34 = vpop.xlane.xlu0 %2846 }
 0x5ae   : > { %7934 = vrcp.f32 %v2847_v34 }
 0x5b1   : > { %v4203_v10 = vpop.permute.xlu0 %4202 }
 0x5b2   : > { %v4206_v15 = vsel %vm1464_vm2, %v4203_v10, 0 }
 0x5b3   : > { %v8773_v20 = vand.u32 4294901760, %v4206_v15 }
 0x5b5   : > { %v8780_v25 = vsub.f32 %v4206_v15, %v8773_v20 }
 0x5bb   : > { %v7935_v35 = vpop.eup %7934 }
 0x5bc   : > { %v2849_v36 = vmul.f32 %v7935_v35, %v7933_v32 }
 0x5be   : > { %v2854_v37 = vsel %vm1464_vm2, %v2849_v36, 0 }
 0x5bf   : > { %v2922_v38 = vand.u32 4294901760, %v2854_v37 }
 0x5c1   : > { %v2923_v39 = vsub.f32 %v2854_v37, %v2922_v38  ;;  %7573 = vmatmul.mubr.f32.vlgmr.msra.gmra.mxu1 %v2922_v38 }
 0x5c2   : > { %7581 = vmatpush3.msra.mxu1 %v2887_v27  ;;  %7582 = vmatprep.mubr.msk.f32.mxu1 %vm8167_vm0, %v8166_v0 }
 0x5c3   : > { %7590 = vmatprep.subr.mxu1 %v8166_v0  ;;  %v2924_v41 = vand.u32 4294901760, %v2923_v39 }
 0x5c5   : > { %7583 = vmatmul.mubr.f32.vlgmr.msra.gmra.mxu1 %v2924_v41  ;;  %v2925_v42 = vsub.f32 %v2923_v39, %v2924_v41 }
 0x5c6   : > { %7591 = vmatpush3.msra.mxu1 %v2887_v27  ;;  %7592 = vmatprep.mubr.msk.f32.mxu1 %vm8167_vm0, %v8166_v0  ;;  %v3822_v27 = vand.u32 4294901760, %v3821_v21 }
 0x5c7   : > { %v2926_v43 = vand.u32 4294901760, %v2925_v42  ;;  %7600 = vmatprep.subr.mxu1 %v8166_v0 }
 0x5c8   : > { %v3823_v31 = vsub.f32 %v3821_v21, %v3822_v27 }
 0x5c9   : > { %7568 = vmatmul.mubr.f32.vlgmr.msra.gmra.mxu0 %v2926_v43  ;;  %7593 = vmatmul.mubr.f32.vlgmr.msra.gmra.mxu1 %v2922_v38 }
 0x5ca   : > { %7576 = vmatpush3.msra.mxu0 %v2964_v28  ;;  %7577 = vmatprep.mubr.msk.f32.mxu0 %vm8167_vm0, %v8166_v0  ;;  %v4204_v28 = vsel %vm1464_vm2, %v4201_v26, 0  ;;  %v3824_v34 = vand.u32 4294901760, %v3823_v31 }
 0x5cb   : > { %7585 = vmatprep.subr.mxu0 %v8166_v0  ;;  %7602 = vmatprep.mubr.msk.f32.mxu1 %vm8167_vm0, %v8166_v0  ;;  %v4274_v30 = vand.u32 4294901760, %v4204_v28 }
 0x5cc   : > { %7601 = vmatpush3.msra.mxu1 %v3416_v49 }
 0x5cd   : > { %7578 = vmatmul.mubr.f32.vlgmr.msra.gmra.mxu0 %v2923_v39  ;;  %7610 = vmatprep.subr.mxu1 %v8166_v0  ;;  %v4275_v33 = vsub.f32 %v4204_v28, %v4274_v30 }
 0x5ce   : > { %7586 = vmatpush3.msra.mxu0 %v2965_v29  ;;  %7587 = vmatprep.mubr.msk.f32.mxu0 %vm8167_vm0, %v8166_v0  ;;  %v4317_v29 = vand.u32 4294901760, %v8780_v25 }
 0x5cf   : > { %7595 = vmatprep.subr.mxu0 %v8166_v0  ;;  %v4276_v36 = vand.u32 4294901760, %v4275_v33 }
 0x5d0   : > { %v4318_v32 = vsub.f32 %v8780_v25, %v4317_v29 }
 0x5d1   : > { %7588 = vmatmul.mubr.f32.vlgmr.msra.gmra.mxu0 %v2922_v38  ;;  %v4277_v37 = vsub.f32 %v4275_v33, %v4276_v36 }
 0x5d2   : > { %7597 = vmatprep.mubr.msk.f32.mxu0 %vm8167_vm0, %v8166_v0  ;;  %7596 = vmatpush3.msra.mxu0 %v3336_v45  ;;  %v4319_v35 = vand.u32 4294901760, %v4318_v32 }
 0x5d3   : > { %7605 = vmatprep.subr.mxu0 %v8166_v0  ;;  %v4278_v38 = vand.u32 4294901760, %v4277_v37 }
 0x681   : > { %v3004_v50 = vpop.f32.mrf.mxu1 }
 0x683   : > { %v7574_v51 = vpop.f32.mrf.mxu1 }
 0x685   : > { %v3152_v52 = vpop.f32.mrf.mxu1 }
 0x687   : > { %v7584_v53 = vpop.f32.mrf.mxu1 }
 0x689   : > { %v2928_v54 = vpop.f32.mrf.mxu0  ;;  %v3298_v55 = vpop.f32.mrf.mxu1 }
 0x68a   : > { %v3005_v58 = vadd.f32 %v3004_v50, %v2928_v54 }
 0x68b   : > { %v7569_v56 = vpop.f32.mrf.mxu0  ;;  %v7594_v57 = vpop.f32.mrf.mxu1 }
 0x68d   : > { %v3078_v60 = vpop.f32.mrf.mxu0 }
 0x68e   : > { %v3079_v61 = vadd.f32 %v3078_v60, %v3005_v58 }
 0x68f   : > { %v7579_v62 = vpop.f32.mrf.mxu0 }
 0x690   : > { %v3153_v1 = vadd.f32 %v3152_v52, %v3079_v61 }
 0x691   : > { %v3226_v2 = vpop.f32.mrf.mxu0 }
 0x692   : > { %v3227_v4 = vadd.f32 %v3226_v2, %v3153_v1 }
 0x693   : > { %v7589_v5 = vpop.f32.mrf.mxu0 }
 0x694   : > { %v3299_v9 = vadd.f32 %v3298_v55, %v3227_v4 }
 0x696   : > { %v3303_v11 = vsel %vm1464_vm2, %v3299_v9, 0 }
 0x697   : > { %v3371_v12 = vand.u32 4294901760, %v3303_v11 }
 0x699   : > { %v3372_v16 = vsub.f32 %v3303_v11, %v3371_v12  ;;  %7603 = vmatmul.mubr.f32.vlgmr.msra.gmra.mxu1 %v3371_v12 }
 0x69a   : > { %7611 = vmatpush3.msra.mxu1 %v3336_v45  ;;  %7612 = vmatprep.mubr.msk.f32.mxu1 %vm8167_vm0, %v8166_v0 }
 0x69b   : > { %v3373_v18 = vand.u32 4294901760, %v3372_v16  ;;  %7620 = vmatprep.subr.mxu1 %v8166_v0 }
 0x69d   : > { %7613 = vmatmul.mubr.f32.vlgmr.msra.gmra.mxu1 %v3373_v18  ;;  %v3374_v3 = vsub.f32 %v3372_v16, %v3373_v18 }
 0x69e   : > { %7621 = vmatpush3.msra.mxu1 %v3336_v45  ;;  %7622 = vmatprep.mubr.msk.f32.mxu1 %vm8167_vm0, %v8166_v0 }
 0x69f   : > { %v3375_v22 = vand.u32 4294901760, %v3374_v3  ;;  %7630 = vmatprep.subr.mxu1 %v8166_v0 }
 0x6a1   : > { %7598 = vmatmul.mubr.f32.vlgmr.msra.gmra.mxu0 %v3375_v22  ;;  %7623 = vmatmul.mubr.f32.vlgmr.msra.gmra.mxu1 %v3371_v12 }
 0x6a2   : > { %7606 = vmatpush3.msra.mxu0 %v8752_v46  ;;  %7607 = vmatprep.mubr.msk.f32.mxu0 %vm8167_vm0, %v8166_v0 }
 0x6a3   : > { %7631 = vmatpush3.msra.mxu1 %v3865_v24  ;;  %7632 = vmatprep.mubr.msk.f32.mxu1 %vm8167_vm0, %v8166_v0 }
 0x6a4   : > { %7615 = vmatprep.subr.mxu0 %v8166_v0  ;;  %7640 = vmatprep.subr.mxu1 %v8166_v0 }
 0x6a5   : > { %7608 = vmatmul.mubr.f32.vlgmr.msra.gmra.mxu0 %v3372_v16  ;;  %7633 = vmatmul.mubr.f32.vlgmr.msra.gmra.mxu1 %v8767_v17 }
 0x6a6   : > { %7616 = vmatpush3.msra.mxu0 %v3414_v47  ;;  %7617 = vmatprep.mubr.msk.f32.mxu0 %vm8167_vm0, %v8166_v0 }
 0x6a7   : > { %7641 = vmatpush3.msra.mxu1 %v3785_v63  ;;  %7642 = vmatprep.mubr.msk.f32.mxu1 %vm8167_vm0, %v8166_v0 }
 0x6a8   : > { %7625 = vmatprep.subr.mxu0 %v8166_v0  ;;  %7650 = vmatprep.subr.mxu1 %v8166_v0 }
 0x6a9   : > { %7618 = vmatmul.mubr.f32.vlgmr.msra.gmra.mxu0 %v3371_v12  ;;  %7643 = vmatmul.mubr.f32.vlgmr.msra.gmra.mxu1 %v3822_v27 }
 0x6aa   : > { %7626 = vmatpush3.msra.mxu0 %v3785_v63  ;;  %7651 = vmatpush3.msra.mxu1 %v3785_v63 }
 0x6ab   : > { %7627 = vmatprep.mubr.msk.f32.mxu0 %vm8167_vm0, %v8166_v0  ;;  %7652 = vmatprep.mubr.msk.f32.mxu1 %vm8167_vm0, %v8166_v0 }
 0x6ac   : > { %7660 = vmatprep.subr.mxu1 %v8166_v0  ;;  %7635 = vmatprep.subr.mxu0 %v8166_v0 }
 0x6ad   : > { %7628 = vmatmul.mubr.f32.vlgmr.msra.gmra.mxu0 %v3824_v34  ;;  %7653 = vmatmul.mubr.f32.vlgmr.msra.gmra.mxu1 %v8767_v17 }
 0x6ae   : > { %7661 = vmatpush3.xpose.msra.mxu1 %v4319_v35  ;;  %7636 = vmatpush3.msra.mxu0 %v8758_v6 }
 0x6af   : > { %7637 = vmatprep.mubr.msk.f32.mxu0 %vm8167_vm0, %v8166_v0  ;;  %7662 = vmatprep.mubr.msk.f32.mxu1 %vm8167_vm0, %v8166_v0 }
 0x6b0   : > { %7670 = vmatprep.subr.mxu1 %v8166_v0  ;;  %7645 = vmatprep.subr.mxu0 %v8166_v0 }
 0x6b1   : > { %7638 = vmatmul.mubr.f32.vlgmr.msra.gmra.mxu0 %v3821_v21  ;;  %7663 = vmatmul.mubr.f32.vlgmr.msra.gmra.mxu1 %v4274_v30 }
 0x6b2   : > { %7671 = vmatpush3.xpose.msra.mxu1 %v8773_v20  ;;  %7646 = vmatpush3.msra.mxu0 %v3863_v13 }
 0x6b3   : > { %7647 = vmatprep.mubr.msk.f32.mxu0 %vm8167_vm0, %v8166_v0  ;;  %7655 = vmatprep.subr.mxu0 %v8166_v0 }
 0x6b4   : > { %7672 = vmatprep.mubr.msk.f32.mxu1 %vm8167_vm0, %v8166_v0  ;;  %7680 = vmatprep.subr.mxu1 %v8166_v0 }
 0x6b5   : > { %7648 = vmatmul.mubr.f32.vlgmr.msra.gmra.mxu0 %v8767_v17  ;;  %7673 = vmatmul.mubr.f32.vlgmr.msra.gmra.mxu1 %v4276_v36 }
 0x6b6   : > { %7656 = vmatpush3.xpose.msra.mxu0 %v8773_v20  ;;  %7681 = vmatpush3.xpose.msra.mxu1 %v8773_v20 }
 0x6b7   : > { %7657 = vmatprep.mubr.msk.f32.mxu0 %vm8167_vm0, %v8166_v0  ;;  %7665 = vmatprep.subr.mxu0 %v8166_v0 }
 0x6b8   : > { %7682 = vmatprep.mubr.msk.f32.mxu1 %vm8167_vm0, %v8166_v0  ;;  %7690 = vmatprep.subr.mxu1 %v8166_v0 }
 0x6b9   : > { %7658 = vmatmul.mubr.f32.vlgmr.msra.gmra.mxu0 %v4278_v38  ;;  %7683 = vmatmul.mubr.f32.vlgmr.msra.gmra.mxu1 %v4274_v30 }
 0x6ba   : > { %7666 = vmatpush3.xpose.msra.mxu0 %v8780_v25  ;;  %7667 = vmatprep.mubr.msk.f32.mxu0 %vm8167_vm0, %v8166_v0 }
 0x6bb   : > { %7675 = vmatprep.subr.mxu0 %v8166_v0  ;;  %7692 = vmatprep.mubr.msk.f32.mxu1 %vm8167_vm0, %v8166_v0 }
 0x6bd   : > { %7668 = vmatmul.mubr.f32.vlgmr.msra.gmra.mxu0 %v4275_v33 }
 0x6be   : > { %7676 = vmatpush3.xpose.msra.mxu0 %v4317_v29  ;;  %7677 = vmatprep.mubr.msk.f32.mxu0 %vm8167_vm0, %v8166_v0 }
 0x6bf   : > { %7685 = vmatprep.subr.mxu0 %v8166_v0 }
 0x6c1   : > { %7678 = vmatmul.mubr.f32.vlgmr.msra.gmra.mxu0 %v4274_v30 }
 0x6c2   : > { %7687 = vmatprep.mubr.msk.f32.mxu0 %vm8167_vm0, %v8166_v0 }
 0x759   : > { %v3453_v39 = vpop.f32.mrf.mxu1 }
 0x75b   : > { %v7604_v41 = vpop.f32.mrf.mxu1 }
 0x75d   : > { %v3601_v42 = vpop.f32.mrf.mxu1 }
 0x75f   : > { %v7614_v43 = vpop.f32.mrf.mxu1 }
 0x761   : > { %v3377_v44 = vpop.f32.mrf.mxu0  ;;  %v3747_v45 = vpop.f32.mrf.mxu1 }
 0x762   : > { %v3454_v46 = vadd.f32 %v3453_v39, %v3377_v44 }
 0x763   : > { %v7599_v47 = vpop.f32.mrf.mxu0  ;;  %v7624_v48 = vpop.f32.mrf.mxu1 }
 0x765   : > { %v3527_v49 = vpop.f32.mrf.mxu0  ;;  %v3902_v50 = vpop.f32.mrf.mxu1 }
 0x766   : > { %v3528_v51 = vadd.f32 %v3527_v49, %v3454_v46 }
 0x767   : > { %v7609_v52 = vpop.f32.mrf.mxu0  ;;  %v7634_v53 = vpop.f32.mrf.mxu1 }
 0x768   : > { %v3602_v54 = vadd.f32 %v3601_v42, %v3528_v51 }
 0x769   : > { %v3675_v55 = vpop.f32.mrf.mxu0  ;;  %v4050_v56 = vpop.f32.mrf.mxu1 }
 0x76a   : > { %v3676_v57 = vadd.f32 %v3675_v55, %v3602_v54  ;;  %v1458_v55 = vld [vmem:[#allocation10 + $0x10] sm:$0xff] }
 0x76b   : > { %v7619_v58 = vpop.f32.mrf.mxu0  ;;  %v7644_v59 = vpop.f32.mrf.mxu1 }
 0x76c   : > { %v3748_v60 = vadd.f32 %v3747_v45, %v3676_v57 }
 0x76d   : > { %v3826_v61 = vpop.f32.mrf.mxu0  ;;  %v4196_v62 = vpop.f32.mrf.mxu1 }
 0x76e   : > { %v3827_v63 = vadd.f32 %v3826_v61, %v3748_v60 }
 0x76f   : > { %v7629_v1 = vpop.f32.mrf.mxu0  ;;  %v7654_v2 = vpop.f32.mrf.mxu1 }
 0x770   : > { %v3903_v4 = vadd.f32 %v3902_v50, %v3827_v63 }
 0x771   : > { %v3976_v5 = vpop.f32.mrf.mxu0  ;;  %v4356_v6 = vpop.f32.mrf.mxu1 }
 0x772   : > { %v3977_v9 = vadd.f32 %v3976_v5, %v3903_v4 }
 0x773   : > { %v7639_v10 = vpop.f32.mrf.mxu0  ;;  %v7664_v11 = vpop.f32.mrf.mxu1 }
 0x774   : > { %v4051_v12 = vadd.f32 %v4050_v56, %v3977_v9  ;;  %v5153_v56 = vand.u32 4294901760, %v1458_v55 }
 0x775   : > { %v4124_v13 = vpop.f32.mrf.mxu0  ;;  %v4504_v14 = vpop.f32.mrf.mxu1 }
 0x776   : > { %v4125_v15 = vadd.f32 %v4124_v13, %v4051_v12  ;;  %v5230_v57 = vsub.f32 %v1458_v55, %v5153_v56 }
 0x777   : > { %v7649_v16 = vpop.f32.mrf.mxu0  ;;  %v7674_v17 = vpop.f32.mrf.mxu1 }
 0x778   : > { %v8842_v18 = vadd.f32 %v4196_v62, %v4125_v15  ;;  %v5231_v58 = vand.u32 4294901760, %v5230_v57 }
 0x779   : > { %v4280_v19 = vpop.f32.mrf.mxu0  ;;  %v4650_v20 = vpop.f32.mrf.mxu1 }
 0x77a   : > { %v4357_v22 = vadd.f32 %v4356_v6, %v4280_v19  ;;  %v5232_v59 = vsub.f32 %v5230_v57, %v5231_v58 }
 0x77b   : > { %v7659_v3 = vpop.f32.mrf.mxu0  ;;  %v7684_v21 = vpop.f32.mrf.mxu1 }
 0x77c   : > { %v5233_v60 = vand.u32 4294901760, %v5232_v59 }
 0x77d   : > { %v4430_v24 = vpop.f32.mrf.mxu0 }
 0x77e   : > { %v4431_v25 = vadd.f32 %v4430_v24, %v4357_v22 }
 0x77f   : > { %v7669_v26 = vpop.f32.mrf.mxu0 }
 0x780   : > { %v4505_v27 = vadd.f32 %v4504_v14, %v4431_v25 }
 0x781   : > { %v4578_v28 = vpop.f32.mrf.mxu0 }
 0x782   : > { %v4579_v29 = vadd.f32 %v4578_v28, %v4505_v27 }
 0x783   : > { %v7679_v30 = vpop.f32.mrf.mxu0 }
 0x784   : > { %v4651_v31 = vadd.f32 %v4650_v20, %v4579_v29 }
 0x786   : > { %v4654_v32 = vmul.f32 0.35355338, %v4651_v31 }
 0x788   : > { %v4655_v33 = vsel %vm1918_vm3, %v4654_v32, -1e+30 }
 0x789   : > { %v4656_v34 = vsel %vm1464_vm2, %v4655_v33, -inf }
 0x78a   : > { %4657 = vmax.xlane.f32.xlu1 %v4656_v34 }
 0x79b   : > { %4667 = vrot.lane.b32.xlu1 %v8631_v40, %s8172_s29  ;;  %s8081_s29 = scalar_lea.vmem %s6993_s2, 128 }
 0x79c   : > { %p8082_p12 = scmp.ne.s32.totalorder %s6993_s2, %s8081_s29 }
 0x79e   : > { %p8083_p5 = pnand %p8082_p12, %p9044_p0 }
 0x79f   : > { %5569 = vrot.lane.b32.xlu1 %v8627_v23, %s8173_s18 }
 0x7a0   : > { %p8084_p3 = pneg %p8083_p5 }
 0x813   : > { %v4658_v35 = vpop.xlane.xlu1 %4657 }
 0x814   : > { %v4659_v36 = vsub.f32 %v4655_v33, %v4658_v35 }
 0x816   : > { %v4660_v37 = vmul.f32 1.442695, %v4659_v36 }
 0x817   : > { %v4668_v38 = vpop.permute.xlu1 %4667 }
 0x818   : > { %7936 = vpow2.f32 %v4660_v37  ;;  %v4704_v39 = vand.u32 4294901760, %v4668_v38 }
 0x81a   : > { %v4781_v41 = vsub.f32 %v4668_v38, %v4704_v39  ;;  %7686 = vmatpush3.msra.mxu0 %v4704_v39 }
 0x81b   : > { %7695 = vmatprep.subr.mxu0 %v8166_v0  ;;  %v5570_v22 = vpop.permute.xlu1 %5569 }
 0x81c   : > { %v4782_v42 = vand.u32 4294901760, %v4781_v41  ;;  %v5573_v26 = vsel %vm1464_vm2, %v5570_v22, 0 }
 0x81d   : > { %v5643_v29 = vand.u32 4294901760, %v5573_v26 }
 0x81e   : > { %v4783_v43 = vsub.f32 %v4781_v41, %v4782_v42 }
 0x81f   : > { %v5644_v33 = vsub.f32 %v5573_v26, %v5643_v29 }
 0x820   : > { %v4784_v44 = vand.u32 4294901760, %v4783_v43 }
 0x821   : > { %v5645_v36 = vand.u32 4294901760, %v5644_v33 }
 0x822   : > { %7691 = vmatpush3.msra.mxu1 %v4784_v44 }
 0x823   : > { %7700 = vmatprep.subr.mxu1 %v8166_v0  ;;  %v5646_v37 = vsub.f32 %v5644_v33, %v5645_v36 }
 0x825   : > { %v7937_v45 = vpop.eup %7936  ;;  %v5647_v38 = vand.u32 4294901760, %v5646_v37 }
 0x826   : > { %v4662_v46 = vsel %vm1464_vm2, %v7937_v45, 0.0 }
 0x827   : > { %4663 = vadd.xlane.f32.xlu0 %v4662_v46 }
 0x83d   : > { %5571 = vrot.lane.b32.xlu0 %v8631_v40, %s8173_s18  ;;  %s8175_s18 = smov [#allocation11]  }
 0x8b0   : > { %v4664_v23 = vpop.xlane.xlu0 %4663 }
 0x8b1   : > { %7938 = vrcp.f32 %v4664_v23 }
 0x8b4   : > { %v5572_v5 = vpop.permute.xlu0 %5571 }
 0x8b5   : > { %v5575_v11 = vsel %vm1464_vm2, %v5572_v5, 0 }
 0x8b6   : > { %v5608_v15 = vand.u32 4294901760, %v5575_v11 }
 0x8b8   : > { %v5685_v3 = vsub.f32 %v5575_v11, %v5608_v15 }
 0x8ba   : > { %v5686_v27 = vand.u32 4294901760, %v5685_v3 }
 0x8bc   : > { %v5687_v31 = vsub.f32 %v5685_v3, %v5686_v27 }
 0x8be   : > { %v7939_v47 = vpop.eup %7938  ;;  %v5688_v35 = vand.u32 4294901760, %v5687_v31 }
 0x8bf   : > { %v4666_v48 = vmul.f32 %v7939_v47, %v7937_v45 }
 0x8c1   : > { %v4671_v49 = vsel %vm1464_vm2, %v4666_v48, 0 }
 0x8c2   : > { %v4739_v50 = vand.u32 4294901760, %v4671_v49 }
 0x8c4   : > { %v4740_v51 = vsub.f32 %v4671_v49, %v4739_v50  ;;  %7693 = vmatmul.mubr.f32.vlgmr.msra.gmra.mxu1 %v4739_v50 }
 0x8c5   : > { %7701 = vmatpush3.msra.mxu1 %v4704_v39  ;;  %7702 = vmatprep.mubr.msk.f32.mxu1 %vm8167_vm0, %v8166_v0 }
 0x8c6   : > { %7710 = vmatprep.subr.mxu1 %v8166_v0  ;;  %v4741_v52 = vand.u32 4294901760, %v4740_v51 }
 0x8c8   : > { %7703 = vmatmul.mubr.f32.vlgmr.msra.gmra.mxu1 %v4741_v52  ;;  %v4742_v53 = vsub.f32 %v4740_v51, %v4741_v52 }
 0x8c9   : > { %7711 = vmatpush3.msra.mxu1 %v4704_v39  ;;  %7712 = vmatprep.mubr.msk.f32.mxu1 %vm8167_vm0, %v8166_v0 }
 0x8ca   : > { %v4743_v54 = vand.u32 4294901760, %v4742_v53  ;;  %7720 = vmatprep.subr.mxu1 %v8166_v0 }
 0x8cc   : > { %7688 = vmatmul.mubr.f32.vlgmr.msra.gmra.mxu0 %v4743_v54  ;;  %7713 = vmatmul.mubr.f32.vlgmr.msra.gmra.mxu1 %v4739_v50 }
 0x8cd   : > { %7696 = vmatpush3.msra.mxu0 %v4781_v41  ;;  %7697 = vmatprep.mubr.msk.f32.mxu0 %vm8167_vm0, %v8166_v0 }
 0x8ce   : > { %7705 = vmatprep.subr.mxu0 %v8166_v0  ;;  %7722 = vmatprep.mubr.msk.f32.mxu1 %vm8167_vm0, %v8166_v0 }
 0x8cf   : > { %7721 = vmatpush3.msra.mxu1 %v5233_v60 }
 0x8d0   : > { %7698 = vmatmul.mubr.f32.vlgmr.msra.gmra.mxu0 %v4740_v51  ;;  %7730 = vmatprep.subr.mxu1 %v8166_v0 }
 0x8d1   : > { %7706 = vmatpush3.msra.mxu0 %v4782_v42  ;;  %7707 = vmatprep.mubr.msk.f32.mxu0 %vm8167_vm0, %v8166_v0 }
 0x8d2   : > { %7715 = vmatprep.subr.mxu0 %v8166_v0 }
 0x8d4   : > { %7708 = vmatmul.mubr.f32.vlgmr.msra.gmra.mxu0 %v4739_v50 }
 0x8d5   : > { %7717 = vmatprep.mubr.msk.f32.mxu0 %vm8167_vm0, %v8166_v0  ;;  %7716 = vmatpush3.msra.mxu0 %v5153_v56 }
 0x8d6   : > { %7725 = vmatprep.subr.mxu0 %v8166_v0 }
 0x984   : > { %v4821_v61 = vpop.f32.mrf.mxu1 }
 0x986   : > { %v7694_v62 = vpop.f32.mrf.mxu1 }
 0x988   : > { %v4969_v63 = vpop.f32.mrf.mxu1 }
 0x98a   : > { %v7704_v1 = vpop.f32.mrf.mxu1 }
 0x98c   : > { %v4745_v2 = vpop.f32.mrf.mxu0  ;;  %v5115_v4 = vpop.f32.mrf.mxu1 }
 0x98d   : > { %v4822_v10 = vadd.f32 %v4821_v61, %v4745_v2 }
 0x98e   : > { %v7689_v6 = vpop.f32.mrf.mxu0  ;;  %v7714_v9 = vpop.f32.mrf.mxu1 }
 0x990   : > { %v4895_v12 = vpop.f32.mrf.mxu0 }
 0x991   : > { %v4896_v13 = vadd.f32 %v4895_v12, %v4822_v10 }
 0x992   : > { %v7699_v14 = vpop.f32.mrf.mxu0 }
 0x993   : > { %v4970_v16 = vadd.f32 %v4969_v63, %v4896_v13 }
 0x994   : > { %v5043_v17 = vpop.f32.mrf.mxu0 }
 0x995   : > { %v5044_v19 = vadd.f32 %v5043_v17, %v4970_v16 }
 0x996   : > { %v7709_v20 = vpop.f32.mrf.mxu0 }
 0x997   : > { %v5116_v21 = vadd.f32 %v5115_v4, %v5044_v19 }
 0x999   : > { %v5120_v24 = vsel %vm1464_vm2, %v5116_v21, 0 }
 0x99a   : > { %v5188_v25 = vand.u32 4294901760, %v5120_v24 }
 0x99c   : > { %v5189_v28 = vsub.f32 %v5120_v24, %v5188_v25  ;;  %7723 = vmatmul.mubr.f32.vlgmr.msra.gmra.mxu1 %v5188_v25 }
 0x99d   : > { %7731 = vmatpush3.msra.mxu1 %v5153_v56  ;;  %7732 = vmatprep.mubr.msk.f32.mxu1 %vm8167_vm0, %v8166_v0 }
 0x99e   : > { %v5190_v30 = vand.u32 4294901760, %v5189_v28  ;;  %7740 = vmatprep.subr.mxu1 %v8166_v0 }
 0x9a0   : > { %7733 = vmatmul.mubr.f32.vlgmr.msra.gmra.mxu1 %v5190_v30  ;;  %v5191_v32 = vsub.f32 %v5189_v28, %v5190_v30 }
 0x9a1   : > { %7741 = vmatpush3.msra.mxu1 %v5153_v56  ;;  %7742 = vmatprep.mubr.msk.f32.mxu1 %vm8167_vm0, %v8166_v0 }
 0x9a2   : > { %7750 = vmatprep.subr.mxu1 %v8166_v0  ;;  %v5192_v34 = vand.u32 4294901760, %v5191_v32 }
 0x9a4   : > { %7718 = vmatmul.mubr.f32.vlgmr.msra.gmra.mxu0 %v5192_v34  ;;  %7743 = vmatmul.mubr.f32.vlgmr.msra.gmra.mxu1 %v5188_v25  ;;  %v1459_v34 = vld [vmem:[#allocation10 + $0x18] sm:$0xff] }
 0x9a5   : > { %7751 = vmatpush3.xpose.msra.mxu1 %v5688_v35  ;;  %7726 = vmatpush3.msra.mxu0 %v5230_v57  ;;  %v6522_v35 = vand.u32 4294901760, %v1459_v34 }
 0x9a6   : > { %7727 = vmatprep.mubr.msk.f32.mxu0 %vm8167_vm0, %v8166_v0  ;;  %7752 = vmatprep.mubr.msk.f32.mxu1 %vm8167_vm0, %v8166_v0 }
 0x9a7   : > { %7760 = vmatprep.subr.mxu1 %v8166_v0  ;;  %7735 = vmatprep.subr.mxu0 %v8166_v0 }
 0x9a8   : > { %7728 = vmatmul.mubr.f32.vlgmr.msra.gmra.mxu0 %v5189_v28  ;;  %7753 = vmatmul.mubr.f32.vlgmr.msra.gmra.mxu1 %v5643_v29 }
 0x9a9   : > { %7761 = vmatpush3.xpose.msra.mxu1 %v5608_v15  ;;  %7736 = vmatpush3.msra.mxu0 %v5231_v58 }
 0x9aa   : > { %7737 = vmatprep.mubr.msk.f32.mxu0 %vm8167_vm0, %v8166_v0  ;;  %7745 = vmatprep.subr.mxu0 %v8166_v0 }
 0x9ab   : > { %7762 = vmatprep.mubr.msk.f32.mxu1 %vm8167_vm0, %v8166_v0  ;;  %7770 = vmatprep.subr.mxu1 %v8166_v0 }
 0x9ac   : > { %7738 = vmatmul.mubr.f32.vlgmr.msra.gmra.mxu0 %v5188_v25  ;;  %7763 = vmatmul.mubr.f32.vlgmr.msra.gmra.mxu1 %v5645_v36  ;;  %v6599_v36 = vsub.f32 %v1459_v34, %v6522_v35 }
 0x9ad   : > { %7746 = vmatpush3.xpose.msra.mxu0 %v5608_v15  ;;  %7771 = vmatpush3.xpose.msra.mxu1 %v5608_v15 }
 0x9ae   : > { %7747 = vmatprep.mubr.msk.f32.mxu0 %vm8167_vm0, %v8166_v0  ;;  %7755 = vmatprep.subr.mxu0 %v8166_v0  ;;  %v6600_v37 = vand.u32 4294901760, %v6599_v36 }
 0x9af   : > { %7772 = vmatprep.mubr.msk.f32.mxu1 %vm8167_vm0, %v8166_v0  ;;  %7780 = vmatprep.subr.mxu1 %v8166_v0 }
 0x9b0   : > { %7748 = vmatmul.mubr.f32.vlgmr.msra.gmra.mxu0 %v5647_v38  ;;  %7773 = vmatmul.mubr.f32.vlgmr.msra.gmra.mxu1 %v5643_v29  ;;  %v6601_v38 = vsub.f32 %v6599_v36, %v6600_v37 }
 0x9b1   : > { %7756 = vmatpush3.xpose.msra.mxu0 %v5685_v3  ;;  %7757 = vmatprep.mubr.msk.f32.mxu0 %vm8167_vm0, %v8166_v0 }
 0x9b2   : > { %7765 = vmatprep.subr.mxu0 %v8166_v0  ;;  %7782 = vmatprep.mubr.msk.f32.mxu1 %vm8167_vm0, %v8166_v0 }
 0x9b4   : > { %7758 = vmatmul.mubr.f32.vlgmr.msra.gmra.mxu0 %v5644_v33 }
 0x9b5   : > { %7766 = vmatpush3.xpose.msra.mxu0 %v5686_v27  ;;  %7767 = vmatprep.mubr.msk.f32.mxu0 %vm8167_vm0, %v8166_v0 }
 0x9b6   : > { %7775 = vmatprep.subr.mxu0 %v8166_v0 }
 0x9b8   : > { %7768 = vmatmul.mubr.f32.vlgmr.msra.gmra.mxu0 %v5643_v29 }
 0x9b9   : > { %7777 = vmatprep.mubr.msk.f32.mxu0 %vm8167_vm0, %v8166_v0 }
 0xa5c   : > { %v5270_v39 = vpop.f32.mrf.mxu1 }
 0xa5e   : > { %v7724_v41 = vpop.f32.mrf.mxu1 }
 0xa60   : > { %v5418_v42 = vpop.f32.mrf.mxu1 }
 0xa62   : > { %v7734_v43 = vpop.f32.mrf.mxu1 }
 0xa64   : > { %v5194_v44 = vpop.f32.mrf.mxu0  ;;  %v5564_v45 = vpop.f32.mrf.mxu1 }
 0xa65   : > { %v5271_v46 = vadd.f32 %v5270_v39, %v5194_v44  ;;  %v6602_v39 = vand.u32 4294901760, %v6601_v38 }
 0xa66   : > { %v7719_v23 = vpop.f32.mrf.mxu0  ;;  %v7744_v47 = vpop.f32.mrf.mxu1 }
 0xa68   : > { %v5344_v48 = vpop.f32.mrf.mxu0  ;;  %v5725_v49 = vpop.f32.mrf.mxu1 }
 0xa69   : > { %v5345_v50 = vadd.f32 %v5344_v48, %v5271_v46 }
 0xa6a   : > { %v7729_v51 = vpop.f32.mrf.mxu0  ;;  %v7754_v52 = vpop.f32.mrf.mxu1 }
 0xa6b   : > { %v5419_v53 = vadd.f32 %v5418_v42, %v5345_v50 }
 0xa6c   : > { %v5492_v54 = vpop.f32.mrf.mxu0  ;;  %v5873_v55 = vpop.f32.mrf.mxu1 }
 0xa6d   : > { %v5493_v56 = vadd.f32 %v5492_v54, %v5419_v53 }
 0xa6e   : > { %v7739_v57 = vpop.f32.mrf.mxu0  ;;  %v7764_v58 = vpop.f32.mrf.mxu1 }
 0xa6f   : > { %v5565_v59 = vadd.f32 %v5564_v45, %v5493_v56 }
 0xa70   : > { %v5649_v60 = vpop.f32.mrf.mxu0  ;;  %v6019_v61 = vpop.f32.mrf.mxu1 }
 0xa71   : > { %v8911_v62 = vadd.f32 %v5565_v59, %v8842_v18  ;;  %v5726_v2 = vadd.f32 %v5725_v49, %v5649_v60 }
 0xa72   : > { %v7749_v63 = vpop.f32.mrf.mxu0  ;;  %v7774_v1 = vpop.f32.mrf.mxu1 }
 0xa74   : > { %v5799_v4 = vpop.f32.mrf.mxu0 }
 0xa75   : > { %v5800_v5 = vadd.f32 %v5799_v4, %v5726_v2 }
 0xa76   : > { %v7759_v6 = vpop.f32.mrf.mxu0 }
 0xa77   : > { %v5874_v9 = vadd.f32 %v5873_v55, %v5800_v5 }
 0xa78   : > { %v5947_v10 = vpop.f32.mrf.mxu0 }
 0xa79   : > { %v5948_v11 = vadd.f32 %v5947_v10, %v5874_v9 }
 0xa7a   : > { %v7769_v12 = vpop.f32.mrf.mxu0 }
 0xa7b   : > { %v6020_v13 = vadd.f32 %v6019_v61, %v5948_v11 }
 0xa7d   : > { %v6023_v14 = vmul.f32 0.35355338, %v6020_v13 }
 0xa7f   : > { %v6024_v15 = vsel %vm1918_vm3, %v6023_v14, -1e+30 }
 0xa80   : > { %v6025_v16 = vsel %vm1464_vm2, %v6024_v15, -inf }
 0xa81   : > { %6026 = vmax.xlane.f32.xlu1 %v6025_v16 }
 0xa92   : > { %6036 = vrot.lane.b32.xlu1 %v8631_v40, %s8174_s30  ;;  %s8085_s30 = sshll.u32 %s8175_s18, 4  ;;  %s8086_s30 = int_to_ptr.vmem [resolvable:$false] %s8085_s30 }
 0xa93   : > { %s8087_s17 = scalar_lea.vmem %s8086_s30, 256  ;;  %p8088_p7 = scmp.lt.s32.totalorder %s6993_s2, %s8086_s30 }
 0xa94   : > { %p8089_p9 = scmp.lt.s32.totalorder %s8087_s17, %s8081_s29 }
 0xa96   : > { %p8090_p13 = por %p8089_p9, %p8088_p7 }
 0xa98   : > { %p8091_p8 = pnand %p8090_p13, %p8084_p3 }
 0xb0a   : > { %v6027_v18 = vpop.xlane.xlu1 %6026 }
 0xb0b   : > { %v6028_v17 = vsub.f32 %v6024_v15, %v6027_v18 }
 0xb0d   : > { %v6029_v19 = vmul.f32 1.442695, %v6028_v17 }
 0xb0e   : > { %v6037_v20 = vpop.permute.xlu1 %6036 }
 0xb0f   : > { %7940 = vpow2.f32 %v6029_v19  ;;  %v6073_v3 = vand.u32 4294901760, %v6037_v20 }
 0xb11   : > { %v6150_v21 = vsub.f32 %v6037_v20, %v6073_v3  ;;  %7776 = vmatpush3.msra.mxu0 %v6073_v3 }
 0xb12   : > { %7785 = vmatprep.subr.mxu0 %v8166_v0 }
 0xb13   : > { %v6151_v22 = vand.u32 4294901760, %v6150_v21 }
 0xb15   : > { %v6152_v24 = vsub.f32 %v6150_v21, %v6151_v22 }
 0xb17   : > { %v6153_v7 = vand.u32 4294901760, %v6152_v24 }
 0xb19   : > { %7781 = vmatpush3.msra.mxu1 %v6153_v7 }
 0xb1a   : > { %7790 = vmatprep.subr.mxu1 %v8166_v0 }
 0xb1c   : > { %v7941_v8 = vpop.eup %7940 }
 0xb1d   : > { %v6031_v25 = vsel %vm1464_vm2, %v7941_v8, 0.0 }
 0xb1e   : > { %6032 = vadd.xlane.f32.xlu0 %v6031_v25 }
 0xba7   : > { %v6033_v40 = vpop.xlane.xlu0 %6032 }
 0xba8   : > { %7942 = vrcp.f32 %v6033_v40 }
 0xbb5   : > { %v7943_v26 = vpop.eup %7942 }
 0xbb6   : > { %v6035_v27 = vmul.f32 %v7943_v26, %v7941_v8 }
 0xbb8   : > { %v6040_v28 = vsel %vm1464_vm2, %v6035_v27, 0 }
 0xbb9   : > { %v6108_v29 = vand.u32 4294901760, %v6040_v28 }
 0xbbb   : > { %v6109_v30 = vsub.f32 %v6040_v28, %v6108_v29  ;;  %7783 = vmatmul.mubr.f32.vlgmr.msra.gmra.mxu1 %v6108_v29 }
 0xbbc   : > { %7791 = vmatpush3.msra.mxu1 %v6073_v3  ;;  %7792 = vmatprep.mubr.msk.f32.mxu1 %vm8167_vm0, %v8166_v0 }
 0xbbd   : > { %7800 = vmatprep.subr.mxu1 %v8166_v0  ;;  %v6110_v31 = vand.u32 4294901760, %v6109_v30 }
 0xbbf   : > { %7793 = vmatmul.mubr.f32.vlgmr.msra.gmra.mxu1 %v6110_v31  ;;  %v6111_v32 = vsub.f32 %v6109_v30, %v6110_v31  ;;  %v7133_v31 = vld [vmem:[%s9010_s8] ss:$0 sm:$0xff] }
 0xbc0   : > { %7801 = vmatpush3.msra.mxu1 %v6073_v3  ;;  %7802 = vmatprep.mubr.msk.f32.mxu1 %vm8167_vm0, %v8166_v0  ;;  %v7132_v3 = vld [vmem:[%s9009_s7] ss:$0 sm:$0xff] }
 0xbc1   : > { %v6112_v33 = vand.u32 4294901760, %v6111_v32  ;;  %7810 = vmatprep.subr.mxu1 %v8166_v0 }
 0xbc3   : > { %7778 = vmatmul.mubr.f32.vlgmr.msra.gmra.mxu0 %v6112_v33  ;;  %7803 = vmatmul.mubr.f32.vlgmr.msra.gmra.mxu1 %v6108_v29  ;;  %v7134_v33 = vld [vmem:[%s9011_s9] ss:$0 sm:$0xff] }
 0xbc4   : > { %7786 = vmatpush3.msra.mxu0 %v6150_v21  ;;  %7787 = vmatprep.mubr.msk.f32.mxu0 %vm8167_vm0, %v8166_v0  ;;  %v7946_v21 = vld [vmem:[%s392_s12] sm:$0xff] }
 0xbc5   : > { %7795 = vmatprep.subr.mxu0 %v8166_v0  ;;  %7812 = vmatprep.mubr.msk.f32.mxu1 %vm8167_vm0, %v8166_v0 }
 0xbc6   : > { %7811 = vmatpush3.msra.mxu1 %v6602_v39 }
 0xbc7   : > { %7788 = vmatmul.mubr.f32.vlgmr.msra.gmra.mxu0 %v6109_v30  ;;  %7820 = vmatprep.subr.mxu1 %v8166_v0 }
 0xbc8   : > { %7796 = vmatpush3.msra.mxu0 %v6151_v22  ;;  %7797 = vmatprep.mubr.msk.f32.mxu0 %vm8167_vm0, %v8166_v0 }
 0xbc9   : > { %7805 = vmatprep.subr.mxu0 %v8166_v0 }
 0xbcb   : > { %7798 = vmatmul.mubr.f32.vlgmr.msra.gmra.mxu0 %v6108_v29 }
 0xbcc   : > { %7807 = vmatprep.mubr.msk.f32.mxu0 %vm8167_vm0, %v8166_v0  ;;  %7806 = vmatpush3.msra.mxu0 %v6522_v35 }
 0xbcd   : > { %7815 = vmatprep.subr.mxu0 %v8166_v0 }
 0xc7b   : > { %v6190_v41 = vpop.f32.mrf.mxu1 }
 0xc7d   : > { %v7784_v42 = vpop.f32.mrf.mxu1 }
 0xc7f   : > { %v6338_v43 = vpop.f32.mrf.mxu1 }
 0xc81   : > { %v7794_v44 = vpop.f32.mrf.mxu1 }
 0xc83   : > { %v6114_v45 = vpop.f32.mrf.mxu0  ;;  %v6484_v46 = vpop.f32.mrf.mxu1 }
 0xc84   : > { %v6191_v48 = vadd.f32 %v6190_v41, %v6114_v45 }
 0xc85   : > { %v7779_v23 = vpop.f32.mrf.mxu0  ;;  %v7804_v47 = vpop.f32.mrf.mxu1 }
 0xc87   : > { %v6264_v49 = vpop.f32.mrf.mxu0 }
 0xc88   : > { %v6265_v50 = vadd.f32 %v6264_v49, %v6191_v48 }
 0xc89   : > { %v7789_v51 = vpop.f32.mrf.mxu0 }
 0xc8a   : > { %v6339_v52 = vadd.f32 %v6338_v43, %v6265_v50 }
 0xc8b   : > { %v6412_v53 = vpop.f32.mrf.mxu0 }
 0xc8c   : > { %v6413_v54 = vadd.f32 %v6412_v53, %v6339_v52 }
 0xc8d   : > { %v7799_v55 = vpop.f32.mrf.mxu0 }
 0xc8e   : > { %v6485_v56 = vadd.f32 %v6484_v46, %v6413_v54 }
 0xc90   : > { %v6489_v57 = vsel %vm1464_vm2, %v6485_v56, 0 }
 0xc91   : > { %v6557_v58 = vand.u32 4294901760, %v6489_v57 }
 0xc93   : > { %v6558_v59 = vsub.f32 %v6489_v57, %v6557_v58  ;;  %7813 = vmatmul.mubr.f32.vlgmr.msra.gmra.mxu1 %v6557_v58 }
 0xc94   : > { %7821 = vmatpush3.msra.mxu1 %v6522_v35  ;;  %7822 = vmatprep.mubr.msk.f32.mxu1 %vm8167_vm0, %v8166_v0 }
 0xc95   : > { %v6559_v60 = vand.u32 4294901760, %v6558_v59  ;;  %7830 = vmatprep.subr.mxu1 %v8166_v0 }
 0xc97   : > { %7823 = vmatmul.mubr.f32.vlgmr.msra.gmra.mxu1 %v6559_v60  ;;  %v6560_v61 = vsub.f32 %v6558_v59, %v6559_v60 }
 0xc98   : > { %7831 = vmatpush3.msra.mxu1 %v6522_v35  ;;  %7832 = vmatprep.mubr.msk.f32.mxu1 %vm8167_vm0, %v8166_v0 }
 0xc99   : > { %v6561_v63 = vand.u32 4294901760, %v6560_v61 }
 0xc9b   : > { %7808 = vmatmul.mubr.f32.vlgmr.msra.gmra.mxu0 %v6561_v63  ;;  %7833 = vmatmul.mubr.f32.vlgmr.msra.gmra.mxu1 %v6557_v58 }
 0xc9c   : > { %7816 = vmatpush3.msra.mxu0 %v6599_v36  ;;  %7817 = vmatprep.mubr.msk.f32.mxu0 %vm8167_vm0, %v8166_v0 }
 0xc9d   : > { %7825 = vmatprep.subr.mxu0 %v8166_v0 }
 0xc9f   : > { %7818 = vmatmul.mubr.f32.vlgmr.msra.gmra.mxu0 %v6558_v59 }
 0xca0   : > { %7826 = vmatpush3.msra.mxu0 %v6600_v37  ;;  %7827 = vmatprep.mubr.msk.f32.mxu0 %vm8167_vm0, %v8166_v0 }
 0xca3   : > { %7828 = vmatmul.mubr.f32.vlgmr.msra.gmra.mxu0 %v6557_v58 }
 0xd53   : > { %v6639_v1 = vpop.f32.mrf.mxu1 }
 0xd55   : > { %v7814_v2 = vpop.f32.mrf.mxu1 }
 0xd57   : > { %v6787_v4 = vpop.f32.mrf.mxu1 }
 0xd59   : > { %v7824_v5 = vpop.f32.mrf.mxu1 }
 0xd5b   : > { %v6563_v6 = vpop.f32.mrf.mxu0  ;;  %v6933_v9 = vpop.f32.mrf.mxu1 }
 0xd5c   : > { %v6640_v12 = vadd.f32 %v6639_v1, %v6563_v6 }
 0xd5d   : > { %v7809_v10 = vpop.f32.mrf.mxu0  ;;  %v7834_v11 = vpop.f32.mrf.mxu1 }
 0xd5f   : > { %v6713_v13 = vpop.f32.mrf.mxu0 }
 0xd60   : > { %v6714_v14 = vadd.f32 %v6713_v13, %v6640_v12 }
 0xd61   : > { %v7819_v15 = vpop.f32.mrf.mxu0 }
 0xd62   : > { %v6788_v16 = vadd.f32 %v6787_v4, %v6714_v14 }
 0xd63   : > { %v6861_v18 = vpop.f32.mrf.mxu0 }
 0xd64   : > { %v6862_v17 = vadd.f32 %v6861_v18, %v6788_v16 }
 0xd65   : > { %v7829_v19 = vpop.f32.mrf.mxu0 }
 0xd66   : > { %v6934_v20 = vadd.f32 %v6933_v9, %v6862_v17 }
 0xd68   : > { %v6937_v0 = vadd.f32 %v6934_v20, %v8911_v62 }
 0xd6a   : > { %v6938_v22 = vadd.f32 %v7946_v21, %v6937_v0 }
 0xd6c   : > { %v6946_v24 = vadd.f32 %v7132_v3, %v6938_v22 }
 0xd6e   : > { %v6947_v7 = vsel %vm468_vm1, %v6946_v24, 0.0 }
 0xd6f   : > { %6948 = vadd.xlane.f32.xlu0 %v6947_v7 }
 0xdf8   : > { %v6949_v8 = vpop.xlane.xlu0 %6948 }
 0xdf9   : > { %v6951_v25 = vmul.f32 0.03125, %v6949_v8 }
 0xdfb   : > { %v6952_v40 = vsub.f32 %v6946_v24, %v6951_v25 }
 0xdfd   : > { %v6953_v26 = vmul.f32 %v6952_v40, %v6952_v40 }
 0xdff   : > { %v6954_v27 = vsel %vm468_vm1, %v6953_v26, 0.0 }
 0xe00   : > { %6955 = vadd.xlane.f32.xlu0 %v6954_v27 }
 0xe89   : > { %v6956_v62 = vpop.xlane.xlu0 %6955 }
 0xe8a   : > { %v6957_v28 = vmul.f32 0.03125, %v6956_v62 }
 0xe8c   : > { %v6958_v29 = vadd.f32 1e-05, %v6957_v28 }
 0xe8e   : > { %7944 = vrsqrt.f32 %v6958_v29 }
 0xe9b   : > { %v7945_v30 = vpop.eup %7944 }
 0xe9c   : > { %v6960_v32 = vmul.f32 %v7945_v30, %v6952_v40 }
 0xe9e   : > { %v6968_v34 = vmul.f32 %v7133_v31, %v6960_v32 }
 0xea0   : > { %v6976_v35 = vadd.f32 %v7134_v33, %v6968_v34 }
 0xea2   : > { %6977 = vst.msk [vmem:[%s454_s23] sm:$0xff] %vm468_vm1, %v6976_v35 }
 0xea3   : > { %8094 = shalt.err (!%p8091_p8)
}
 0xea4   : > { %s8095_s20 = scalar_lea.hbm %s6990_s22, 128  ;;  %s8099_s6 = scalar_lea.hbm %s9012_s10, 256 }
 0xea5   : > { %p8096_p10 = scmp.ne.s32.totalorder %s6990_s22, %s8095_s20  ;;  %p8100_p2 = scmp.lt.s32.totalorder %s6990_s22, %s9012_s10 }
 0xea6   : > { %p8101_p4 = scmp.lt.s32.totalorder %s8099_s6, %s8095_s20 }
 0xea7   : > { %p8097_p1 = pnand %p8096_p10, %p9044_p0 }
 0xea8   : > { %p8102_p6 = por %p8101_p4, %p8100_p2 }
 0xea9   : > { %p8098_p11 = pneg %p8097_p1 }
 0xeab   : > { %p8103_p12 = pnand %p8102_p6, %p8098_p11 }
 0xead   : > { %8106 = shalt.err (!%p8103_p12)
}
 0xeae   : > { %7851 = dma.vmem_to_hbm [thread:$0]  (%p9044_p0), %s6993_s2, 128, %s6990_s22, %s6979_s28  }
 0xeaf PF: > { %s9045_s24 = sld [smem:[#allocation18_spill]]  ;;  %s7004_s19 = sand.u32 1, %s8145_s13  }
 0xeb0   : > { %p9047_p3 = scmp.ge.s32.totalorder %s8157_s16, 2  ;;  %s7005_s26 = scalar_lea.sflag [#allocation4], %s7004_s19 }
 0xeb5   : > { %p9046_p5 = scmp.ne.s32.totalorder %s9045_s24, 0 }
 0xeb7   : > { %p7871_p7 = pnand %p9047_p3, %p9046_p5 }
 0xeb9   : > { %p7872_p9 = pneg %p7871_p7 }
 0xebb   : > { %8140 = dma.done.wait (%p7872_p9), %s7005_s26, 128  }
 0xebc   : > { %8142 = vsyncadd (%p7872_p9), %s7005_s26, 4294967168  ;;  %s9048_s16 = sld [smem:[#allocation19_spill]]  ;;  %s9051_s13 = smov %s8149_s14 }
 0xebd   : > { %s9049_s23 = sld [smem:[#allocation17_spill]] }
 0xebe   : > { %s9050_s15 = sld [smem:[#allocation20_spill]] }
 0xec2   : > { %p27_p13 = scmp.ge.s32.totalorder %s9048_s16, 4  }
 0xec3   : > { %s9052_s14 = smov %s9049_s23 }
 0xec4   :  { %29 = sbr.rel (!%p27_p13) target bundleno = 12 (0xc), region = 130 }
 0xec9   :  { %7010 = vsyncpa [#allocation3], 1 }
 0xeca   :  { %7012 = vsyncpa [#allocation3 + $0x1], 1 }
 0xecb   :  { %7013 = vsyncpa [#allocation6], 1 }
 0xecc   :  { %7015 = vsyncpa [#allocation6 + $0x1], 1 }
 0xecd   :  { %7016 = vsyncpa [#allocation9], 1 }
 0xece   :  { %7017 = vsyncpa [#allocation4], 1 }
 0xecf   :  { %7019 = vsyncpa [#allocation4 + $0x1], 1 }

</bundles_post_ra>
